<compile_context>
chip_gen: v5e
topology: v5e:2x2
jax: 0.10.0
libtpu: 0.0.40
codegen_flags: <defaults>
</compile_context>

<pallas_src>
import math

import jax
import jax.numpy as jnp
from jax.experimental import pallas as pl
from jax.experimental.pallas import tpu as pltpu

EPS = 1e-5  # nn.LayerNorm default


def _layernorm(x, g, b):
    mu = jnp.mean(x, axis=-1, keepdims=True)
    var = jnp.mean(jnp.square(x - mu), axis=-1, keepdims=True)
    return (x - mu) * jax.lax.rsqrt(var + EPS) * g + b


def _gelu_exact(x):
    # nn.GELU() default = exact (erf) GELU.
    return 0.5 * x * (1.0 + jax.lax.erf(x * (1.0 / math.sqrt(2.0))))


# ---------------------------------------------------------------------------
# Fused kernel: pos-add + N encoder layers + final LayerNorm
# ---------------------------------------------------------------------------
def _make_fused_kernel(num_heads, dim_head, batch_tile, seq_pad, seq_true):
    H, Dh, Bt, Sp, S = num_heads, dim_head, batch_tile, seq_pad, seq_true
    HD = H * Dh
    M = Bt * Sp
    needs_mask = Sp != S

    def kernel(x_ref, pos_ref,
               ln1_ref, wqkv_ref, bqkv_ref, wo_ref, bo_ref,
               ln2_ref, w1_ref, b1_ref, w2_ref, b2_ref, lnf_ref,
               enc_ref, layers_ref, x_carry):
        D = x_ref.shape[-1]
        l = pl.program_id(1)                      # layer index (inner, "arbitrary")

        # Layer 0: initialize the carried activation = inputs + positional emb.
        @pl.when(l == 0)
        def _():
            x_carry[...] = x_ref[...].astype(jnp.float32) + pos_ref[...][None]

        x2 = x_carry[...].reshape(M, D)           # (Bt*Sp, D) f32 rows

        # ---- Multi-head self-attention block -------------------------------
        ln1 = ln1_ref[0]                          # (2, D): [gamma; beta]
        ln_x = _layernorm(x2, ln1[0:1, :], ln1[1:2, :])

        # Fused QKV projection: one (M, D) @ (D, 3*H*Dh) bf16 matmul, f32 acc.
        # 1/sqrt(Dh) is already folded into the Q columns at pack time.
        qkv = jnp.dot(ln_x.astype(jnp.bfloat16), wqkv_ref[0],
                      preferred_element_type=jnp.float32) + bqkv_ref[0]
        qkv3 = qkv.reshape(Bt, Sp, 3 * HD)        # leading-dim split (Sp % 8 == 0)

        # Stack heads along the leading (batch) dim -> (H*Bt, Sp, Dh) so the
        # score / context matmuls are single head-batched dot_generals.
        def head_stack(base):
            parts = [qkv3[:, :, base + h * Dh: base + (h + 1) * Dh]
                     for h in range(H)]
            return jnp.concatenate(parts, axis=0).astype(jnp.bfloat16)

        q = head_stack(0)                         # (H*Bt, Sp, Dh) bf16
        k = head_stack(HD)
        v = head_stack(2 * HD)

        s = jnp.einsum('bqd,bkd->bqk', q, k,
                       preferred_element_type=jnp.float32)        # (H*Bt, Sp, Sp)
        if needs_mask:
            key_idx = jax.lax.broadcasted_iota(jnp.int32, s.shape, 2)
            s = jnp.where(key_idx < S, s, -1e30)  # mask padded key positions
        s = s - jnp.max(s, axis=-1, keepdims=True)
        e = jnp.exp(s)
        p = e * pl.reciprocal(jnp.sum(e, axis=-1, keepdims=True), approx=True)
        ctx = jnp.einsum('bqk,bkd->bqd', p.astype(jnp.bfloat16), v,
                         preferred_element_type=jnp.float32)      # (H*Bt, Sp, Dh)

        # Back to (M, H*Dh) == torch.cat(heads, dim=-1) layout for fc_concat.
        ctx4 = ctx.reshape(H, Bt, Sp, Dh)
        ctx_cat = jnp.concatenate([ctx4[h] for h in range(H)], axis=-1)
        attn = jnp.dot(ctx_cat.reshape(M, HD).astype(jnp.bfloat16), wo_ref[0],
                       preferred_element_type=jnp.float32) + bo_ref[0]

        resid = attn + x2                         # residual #1

        # ---- MLP block ------------------------------------------------------
        ln2 = ln2_ref[0]
        ln2_x = _layernorm(resid, ln2[0:1, :], ln2[1:2, :])
        h1 = _gelu_exact(jnp.dot(ln2_x.astype(jnp.bfloat16), w1_ref[0],
                                 preferred_element_type=jnp.float32) + b1_ref[0])
        y = jnp.dot(h1.astype(jnp.bfloat16), w2_ref[0],
                    preferred_element_type=jnp.float32) + b2_ref[0]
        x_new = y + resid                         # residual #2

        # Carry to next layer; write this layer's output into (N, B, Sp, D).
        x_new3 = x_new.reshape(Bt, Sp, D)
        x_carry[...] = x_new3
        layers_ref[0] = x_new3.astype(layers_ref.dtype)

        # Final LayerNorm -> encoded_x, only at the last layer step.
        @pl.when(l == pl.num_programs(1) - 1)
        def _():
            lnf = lnf_ref[...]
            enc_ref[...] = _layernorm(x_new, lnf[0:1, :], lnf[1:2, :]).reshape(
                Bt, Sp, D).astype(enc_ref.dtype)

    return kernel


# ---------------------------------------------------------------------------
# Wrapper (single pallas_call)
# ---------------------------------------------------------------------------
def vision_encoder_forward(inputs, packed, num_heads, *, batch_tile=None):
    """Returns (encoded_x, per-layer outputs) like the PyTorch module."""
    B, S, D = inputs.shape
    N = packed["wqkv"].shape[0]
    H = num_heads
    Dh = D // H
    HD = H * Dh
    F = packed["w1"].shape[-1]

    # Pad seq to an f32-sublane multiple; padded keys are masked in-kernel.
    Sp = ((S + 7) // 8) * 8
    Bt = B if batch_tile is None else batch_tile
    assert B % Bt == 0, "batch_tile must divide batch"

    x = inputs
    pos = packed["pos"]
    if Sp != S:
        x = jnp.pad(x, ((0, 0), (0, Sp - S), (0, 0)))
        pos = jnp.pad(pos, ((0, Sp - S), (0, 0)))

    def wspec(*shape):
        nd = len(shape)
        # per-layer stacked parameter: block = one layer's slab, indexed by l
        return pl.BlockSpec((1,) + shape, lambda bt, l, _nd=nd: (l,) + (0,) * _nd)

    in_specs = [
        pl.BlockSpec((Bt, Sp, D), lambda bt, l: (bt, 0, 0)),   # patch embeddings
        pl.BlockSpec((Sp, D), lambda bt, l: (0, 0)),           # positional embedding
        wspec(2, D),                    # ln1 [gamma; beta]
        wspec(D, 3 * HD),               # fused Wqkv (bf16, Q pre-scaled)
        wspec(1, 3 * HD),               # fused bqkv
        wspec(D, D),                    # Wo (fc_concat, bf16)
        wspec(1, D),                    # bo
        wspec(2, D),                    # ln2 [gamma; beta]
        wspec(D, F), wspec(1, F),       # MLP W1 (bf16), b1
        wspec(F, D), wspec(1, D),       # MLP W2 (bf16), b2
        pl.BlockSpec((2, D), lambda bt, l: (0, 0)),            # final LN
    ]
    out_specs = [
        pl.BlockSpec((Bt, Sp, D), lambda bt, l: (bt, 0, 0)),         # encoded_x
        pl.BlockSpec((1, Bt, Sp, D), lambda bt, l: (l, bt, 0, 0)),   # per-layer out
    ]
    out_shape = [
        jax.ShapeDtypeStruct((B, Sp, D), inputs.dtype),
        jax.ShapeDtypeStruct((N, B, Sp, D), inputs.dtype),
    ]

    # Explicit VMEM budget: double-buffered bf16 weights + f32 activations,
    # clamped to 64 MiB so the same setting is valid on v5e/v6e/v7x.
    M = Bt * Sp
    w_bytes = 2 * (D * 3 * HD + D * D + D * F + F * D)            # bf16 weights/layer
    small_bytes = 4 * (3 * HD + 3 * D + F + 6 * D)                # biases + LN params
    act_bytes = 4 * (5 * M * D + M * 3 * HD + 3 * H * Bt * Sp * Sp + M * F + M * HD)
    est = 2 * (w_bytes + small_bytes) + act_bytes + 4 * Bt * Sp * D * 4
    vmem_limit = int(min(64 * 2 ** 20, max(16 * 2 ** 20, 2 * est)))

    encoded, layer_out = pl.pallas_call(
        _make_fused_kernel(H, Dh, Bt, Sp, S),
        grid=(B // Bt, N),
        in_specs=in_specs,
        out_specs=out_specs,
        out_shape=out_shape,
        scratch_shapes=[pltpu.VMEM((Bt, Sp, D), jnp.float32)],   # activation carry
        compiler_params=pltpu.CompilerParams(
            dimension_semantics=("parallel", "arbitrary"),
            vmem_limit_bytes=vmem_limit),
    )(x, pos,
      packed["ln1"], packed["wqkv"], packed["bqkv"], packed["wo"], packed["bo"],
      packed["ln2"], packed["w1"], packed["b1"], packed["w2"], packed["b2"],
      packed["lnf"])

    if Sp != S:
        encoded = encoded[:, :S, :]
        layer_out = layer_out[:, :, :S, :]
    return encoded, layer_out


# ---------------------------------------------------------------------------
# Deterministic parameter init (PyTorch-structured) + packing into fused layout
# ---------------------------------------------------------------------------
def init_params(key, num_layers, D, H, Dh, F, S):
    k_pos, k_layers = jax.random.split(key)
    pos_emb = 0.02 * jax.random.normal(k_pos, (S, D), jnp.float32)

    def lin(k, shape, fan_in):
        return jax.random.normal(k, shape, jnp.float32) / math.sqrt(fan_in)

    layers = []
    layer_keys = jax.random.split(k_layers, num_layers)
    for lk in layer_keys:
        k = jax.random.split(lk, 12)
        layers.append(dict(
            ln1_g=jnp.ones((1, D), jnp.float32), ln1_b=jnp.zeros((1, D), jnp.float32),
            wq=lin(k[0], (H, D, Dh), D), bq=0.01 * jax.random.normal(k[1], (H, 1, Dh), jnp.float32),
            wk=lin(k[2], (H, D, Dh), D), bk=0.01 * jax.random.normal(k[3], (H, 1, Dh), jnp.float32),
            wv=lin(k[4], (H, D, Dh), D), bv=0.01 * jax.random.normal(k[5], (H, 1, Dh), jnp.float32),
            wo=lin(k[6], (D, D), D), bo=0.01 * jax.random.normal(k[7], (1, D), jnp.float32),
            ln2_g=jnp.ones((1, D), jnp.float32), ln2_b=jnp.zeros((1, D), jnp.float32),
            w1=lin(k[8], (D, F), D), b1=0.01 * jax.random.normal(k[9], (1, F), jnp.float32),
            w2=lin(k[10], (F, D), F), b2=0.01 * jax.random.normal(k[11], (1, D), jnp.float32),
        ))
    final_ln = dict(g=jnp.ones((1, D), jnp.float32), b=jnp.zeros((1, D), jnp.float32))
    return pos_emb, layers, final_ln


def pack_params(pos_emb, layer_params, final_ln):
    """Pack per-head / per-layer params into dense, layer-stacked arrays.

    Weights are stored in bf16 (MXU-native); biases/LayerNorm params stay f32.
    The 1/sqrt(Dh) attention scale is folded into the Q weights and bias.
    """
    def cat_heads_w(w):   # (H, D, Dh) -> (D, H*Dh), head-major columns
        H, D, Dh = w.shape
        return jnp.transpose(w, (1, 0, 2)).reshape(D, H * Dh)

    def cat_heads_b(b):   # (H, 1, Dh) -> (1, H*Dh)
        H, _, Dh = b.shape
        return jnp.transpose(b, (1, 0, 2)).reshape(1, H * Dh)

    wqkv, bqkv, wo, bo, w1, b1, w2, b2, ln1, ln2 = ([] for _ in range(10))
    for p in layer_params:
        Dh = p["wq"].shape[-1]
        scale = 1.0 / math.sqrt(float(Dh))
        wqkv.append(jnp.concatenate(
            [cat_heads_w(p["wq"]) * scale, cat_heads_w(p["wk"]), cat_heads_w(p["wv"])],
            axis=-1))
        bqkv.append(jnp.concatenate(
            [cat_heads_b(p["bq"]) * scale, cat_heads_b(p["bk"]), cat_heads_b(p["bv"])],
            axis=-1))
        wo.append(p["wo"]); bo.append(p["bo"])
        w1.append(p["w1"]); b1.append(p["b1"])
        w2.append(p["w2"]); b2.append(p["b2"])
        ln1.append(jnp.concatenate([p["ln1_g"], p["ln1_b"]], axis=0))
        ln2.append(jnp.concatenate([p["ln2_g"], p["ln2_b"]], axis=0))

    return dict(
        pos=pos_emb,
        wqkv=jnp.stack(wqkv).astype(jnp.bfloat16),
        bqkv=jnp.stack(bqkv),
        wo=jnp.stack(wo).astype(jnp.bfloat16), bo=jnp.stack(bo),
        w1=jnp.stack(w1).astype(jnp.bfloat16), b1=jnp.stack(b1),
        w2=jnp.stack(w2).astype(jnp.bfloat16), b2=jnp.stack(b2),
        ln1=jnp.stack(ln1), ln2=jnp.stack(ln2),
        lnf=jnp.concatenate([final_ln["g"], final_ln["b"]], axis=0),
    )


# ---------------------------------------------------------------------------
# Pure-JAX f32 reference (mirrors the PyTorch forward) for a correctness check
# ---------------------------------------------------------------------------
def reference_forward(inputs, pos_emb, layer_params, final_ln):
    x = inputs + pos_emb[None]
    outs = []
    for p in layer_params:
        ln1 = _layernorm(x, p["ln1_g"], p["ln1_b"])
        H, _, Dh = p["wq"].shape
        heads = []
        for h in range(H):
            q = ln1 @ p["wq"][h] + p["bq"][h]
            k = ln1 @ p["wk"][h] + p["bk"][h]
            v = ln1 @ p["wv"][h] + p["bv"][h]
            s = jnp.einsum("bqh,bkh->bqk", q, k) / math.sqrt(float(Dh))
            a = jax.nn.softmax(s, axis=-1)
            heads.append(jnp.einsum("bqk,bkh->bqh", a, v))
        cat = jnp.concatenate(heads, axis=-1)
        resid = cat @ p["wo"] + p["bo"] + x
        ln2 = _layernorm(resid, p["ln2_g"], p["ln2_b"])
        h1 = _gelu_exact(ln2 @ p["w1"] + p["b1"])
        x = h1 @ p["w2"] + p["b2"] + resid
        outs.append(x)
    enc = _layernorm(x, final_ln["g"], final_ln["b"])
    return enc, jnp.stack(outs, axis=0)


if __name__ == "__main__":
    # small ViT-style config: num_patches=9 -> seq=10 (exercises the seq
    # padding + key-mask path), dim_model=32, 4 heads of dim 8, mlp dim 64,
    # 2 encoder layers, batch 2.
    B, num_patches, N, D, H, F = 2, 9, 2, 32, 4, 64
    Dh = D // H
    S = num_patches + 1

    key = jax.random.PRNGKey(0)
    k_in, k_par = jax.random.split(key)
    inputs = jax.random.normal(k_in, (B, S, D), jnp.float32)
    pos_emb, layer_params, final_ln = init_params(k_par, N, D, H, Dh, F, S)
    packed = pack_params(pos_emb, layer_params, final_ln)

    encoded_x, layer_output = vision_encoder_forward(inputs, packed, H)
    encoded_x = jax.block_until_ready(encoded_x)
    layer_output = jax.block_until_ready(layer_output)

    assert encoded_x.shape == (B, S, D)
    assert layer_output.shape == (N, B, S, D)

    # bf16 matmul operands (f32 accumulation) -> compare against the f32
    # reference with bf16-appropriate tolerances.
    ref_enc, ref_layers = reference_forward(inputs, pos_emb, layer_params, final_ln)
    assert jnp.allclose(encoded_x, ref_enc, atol=5e-2, rtol=5e-2)
    assert jnp.allclose(layer_output, ref_layers, atol=5e-2, rtol=5e-2)

    print("KERNEL_OK")
</pallas_src>

<mosaic_0001>
module attributes {stable_mosaic.version = 11 : i64} {
  func.func @kernel(%arg0: i32, %arg1: i32, %arg2: memref<2x16x32xf32, #tpu.memory_space<vmem>>, %arg3: memref<16x32xf32, #tpu.memory_space<vmem>>, %arg4: memref<1x2x32xf32, #tpu.memory_space<vmem>>, %arg5: memref<1x32x96xbf16, #tpu.memory_space<vmem>>, %arg6: memref<1x1x96xf32, #tpu.memory_space<vmem>>, %arg7: memref<1x32x32xbf16, #tpu.memory_space<vmem>>, %arg8: memref<1x1x32xf32, #tpu.memory_space<vmem>>, %arg9: memref<1x2x32xf32, #tpu.memory_space<vmem>>, %arg10: memref<1x32x64xbf16, #tpu.memory_space<vmem>>, %arg11: memref<1x1x64xf32, #tpu.memory_space<vmem>>, %arg12: memref<1x64x32xbf16, #tpu.memory_space<vmem>>, %arg13: memref<1x1x32xf32, #tpu.memory_space<vmem>>, %arg14: memref<2x32xf32, #tpu.memory_space<vmem>>, %arg15: memref<2x16x32xf32, #tpu.memory_space<vmem>>, %arg16: memref<1x2x16x32xf32, #tpu.memory_space<vmem>>, %arg17: memref<2x16x32xf32, #tpu.memory_space<vmem>>) attributes {dimension_semantics = [#tpu.dimension_semantics<parallel>, #tpu.dimension_semantics<arbitrary>], iteration_bounds = array<i64: 1, 2>, scalar_prefetch = 0 : i64, scratch_operands = 1 : i64, tpu.core_type = #tpu.core_type<tc>, window_params = [{transform_indices = @transform_0, window_bounds = array<i64: 2, 16, 32>}, {pipeline_mode = #tpu.pipeline_mode<synchronous>, transform_indices = @transform_1, window_bounds = array<i64: 16, 32>}, {transform_indices = @transform_2, window_bounds = array<i64: 1, 2, 32>}, {transform_indices = @transform_3, window_bounds = array<i64: 1, 32, 96>}, {transform_indices = @transform_4, window_bounds = array<i64: 1, 1, 96>}, {transform_indices = @transform_5, window_bounds = array<i64: 1, 32, 32>}, {transform_indices = @transform_6, window_bounds = array<i64: 1, 1, 32>}, {transform_indices = @transform_7, window_bounds = array<i64: 1, 2, 32>}, {transform_indices = @transform_8, window_bounds = array<i64: 1, 32, 64>}, {transform_indices = @transform_9, window_bounds = array<i64: 1, 1, 64>}, {transform_indices = @transform_10, window_bounds = array<i64: 1, 64, 32>}, {transform_indices = @transform_11, window_bounds = array<i64: 1, 1, 32>}, {pipeline_mode = #tpu.pipeline_mode<synchronous>, transform_indices = @transform_12, window_bounds = array<i64: 2, 32>}, {transform_indices = @transform_13, window_bounds = array<i64: 2, 16, 32>}, {transform_indices = @transform_14, window_bounds = array<i64: 1, 2, 16, 32>}]} {
    %c0_i32 = arith.constant 0 : i32
    %0 = arith.cmpi eq, %arg1, %c0_i32 : i32
    %1 = arith.extui %0 : i1 to i32
    %c0_i32_0 = arith.constant 0 : i32
    %2 = arith.cmpi ne, %1, %c0_i32_0 : i32
    scf.if %2 {
      %c0_62 = arith.constant 0 : index
      %c0_63 = arith.constant 0 : index
      %c0_64 = arith.constant 0 : index
      %155 = vector.load %arg2[%c0_62, %c0_63, %c0_64] : memref<2x16x32xf32, #tpu.memory_space<vmem>>, vector<2x16x32xf32>
      %c0_65 = arith.constant 0 : index
      %c0_66 = arith.constant 0 : index
      %156 = vector.load %arg3[%c0_65, %c0_66] : memref<16x32xf32, #tpu.memory_space<vmem>>, vector<16x32xf32>
      %157 = vector.shape_cast %156 : vector<16x32xf32> to vector<1x16x32xf32>
      %158 = vector.broadcast %157 : vector<1x16x32xf32> to vector<2x16x32xf32>
      %159 = arith.addf %155, %158 : vector<2x16x32xf32>
      %c0_67 = arith.constant 0 : index
      %c0_68 = arith.constant 0 : index
      %c0_69 = arith.constant 0 : index
      %160 = vector.load %arg17[%c0_67, %c0_68, %c0_69] : memref<2x16x32xf32, #tpu.memory_space<vmem>>, vector<2x16x32xf32>
      tpu.vector_store %arg17[%c0_67, %c0_68, %c0_69], %159 {strides = array<i32>} : memref<2x16x32xf32, #tpu.memory_space<vmem>>, vector<2x16x32xf32>,
    } else {
    }
    %c0 = arith.constant 0 : index
    %c0_1 = arith.constant 0 : index
    %c0_2 = arith.constant 0 : index
    %3 = vector.load %arg17[%c0, %c0_1, %c0_2] : memref<2x16x32xf32, #tpu.memory_space<vmem>>, vector<2x16x32xf32>
    %4 = vector.shape_cast %3 : vector<2x16x32xf32> to vector<32x32xf32>
    %c0_3 = arith.constant 0 : index
    %c0_4 = arith.constant 0 : index
    %c0_5 = arith.constant 0 : index
    %5 = vector.load %arg4[%c0_3, %c0_4, %c0_5] : memref<1x2x32xf32, #tpu.memory_space<vmem>>, vector<1x2x32xf32>
    %6 = vector.shape_cast %5 : vector<1x2x32xf32> to vector<2x32xf32>
    %7 = vector.extract_strided_slice %6 {offsets = [0, 0], sizes = [1, 32], strides = [1, 1]} : vector<2x32xf32> to vector<1x32xf32>
    %8 = vector.extract_strided_slice %6 {offsets = [1, 0], sizes = [1, 32], strides = [1, 1]} : vector<2x32xf32> to vector<1x32xf32>
    %cst = arith.constant dense<0.000000e+00> : vector<32xf32>
    %9 = vector.multi_reduction <add>, %4, %cst [1] : vector<32x32xf32> to vector<32xf32>
    %10 = vector.shape_cast %9 : vector<32xf32> to vector<32x1xf32>
    %cst_6 = arith.constant 3.200000e+01 : f32
    %11 = vector.broadcast %cst_6 : f32 to vector<32x1xf32>
    %12 = arith.divf %10, %11 : vector<32x1xf32>
    %13 = vector.broadcast %12 : vector<32x1xf32> to vector<32x32xf32>
    %14 = arith.subf %4, %13 : vector<32x32xf32>
    %15 = arith.mulf %14, %14 : vector<32x32xf32>
    %cst_7 = arith.constant dense<0.000000e+00> : vector<32xf32>
    %16 = vector.multi_reduction <add>, %15, %cst_7 [1] : vector<32x32xf32> to vector<32xf32>
    %17 = vector.shape_cast %16 : vector<32xf32> to vector<32x1xf32>
    %cst_8 = arith.constant 3.200000e+01 : f32
    %18 = vector.broadcast %cst_8 : f32 to vector<32x1xf32>
    %19 = arith.divf %17, %18 : vector<32x1xf32>
    %20 = vector.broadcast %12 : vector<32x1xf32> to vector<32x32xf32>
    %21 = arith.subf %4, %20 : vector<32x32xf32>
    %cst_9 = arith.constant 9.99999974E-6 : f32
    %22 = vector.broadcast %cst_9 : f32 to vector<32x1xf32>
    %23 = arith.addf %19, %22 : vector<32x1xf32>
    %24 = math.rsqrt %23 : vector<32x1xf32>
    %25 = vector.broadcast %24 : vector<32x1xf32> to vector<32x32xf32>
    %26 = arith.mulf %21, %25 : vector<32x32xf32>
    %27 = vector.broadcast %7 : vector<1x32xf32> to vector<32x32xf32>
    %28 = arith.mulf %26, %27 : vector<32x32xf32>
    %29 = vector.broadcast %8 : vector<1x32xf32> to vector<32x32xf32>
    %30 = arith.addf %28, %29 : vector<32x32xf32>
    %31 = arith.truncf %30 : vector<32x32xf32> to vector<32x32xbf16>
    %c0_10 = arith.constant 0 : index
    %c0_11 = arith.constant 0 : index
    %c0_12 = arith.constant 0 : index
    %32 = vector.load %arg5[%c0_10, %c0_11, %c0_12] : memref<1x32x96xbf16, #tpu.memory_space<vmem>>, vector<1x32x96xbf16>
    %33 = vector.shape_cast %32 : vector<1x32x96xbf16> to vector<32x96xbf16>
    %cst_13 = arith.constant dense<0.000000e+00> : vector<32x96xf32>
    %34 = tpu.matmul %31, %33, %cst_13 {dimension_numbers = #tpu.dot_dimension_numbers<[1], [0], [0], [1], [0, 0, 1, 1], [], []>} : vector<32x32xbf16>, vector<32x96xbf16>, vector<32x96xf32> -> vector<32x96xf32>
    %c0_14 = arith.constant 0 : index
    %c0_15 = arith.constant 0 : index
    %c0_16 = arith.constant 0 : index
    %35 = vector.load %arg6[%c0_14, %c0_15, %c0_16] : memref<1x1x96xf32, #tpu.memory_space<vmem>>, vector<1x1x96xf32>
    %36 = vector.shape_cast %35 : vector<1x1x96xf32> to vector<1x96xf32>
    %37 = vector.broadcast %36 : vector<1x96xf32> to vector<32x96xf32>
    %38 = arith.addf %34, %37 : vector<32x96xf32>
    %39 = vector.shape_cast %38 : vector<32x96xf32> to vector<2x16x96xf32>
    %40 = vector.extract_strided_slice %39 {offsets = [0, 0, 0], sizes = [2, 16, 8], strides = [1, 1, 1]} : vector<2x16x96xf32> to vector<2x16x8xf32>
    %41 = vector.extract_strided_slice %39 {offsets = [0, 0, 8], sizes = [2, 16, 8], strides = [1, 1, 1]} : vector<2x16x96xf32> to vector<2x16x8xf32>
    %42 = vector.extract_strided_slice %39 {offsets = [0, 0, 16], sizes = [2, 16, 8], strides = [1, 1, 1]} : vector<2x16x96xf32> to vector<2x16x8xf32>
    %43 = vector.extract_strided_slice %39 {offsets = [0, 0, 24], sizes = [2, 16, 8], strides = [1, 1, 1]} : vector<2x16x96xf32> to vector<2x16x8xf32>
    %44 = tpu.concatenate %40, %41, %42, %43 in 0 : vector<2x16x8xf32>, vector<2x16x8xf32>, vector<2x16x8xf32>, vector<2x16x8xf32> -> vector<8x16x8xf32>
    %45 = arith.truncf %44 : vector<8x16x8xf32> to vector<8x16x8xbf16>
    %46 = vector.extract_strided_slice %39 {offsets = [0, 0, 32], sizes = [2, 16, 8], strides = [1, 1, 1]} : vector<2x16x96xf32> to vector<2x16x8xf32>
    %47 = vector.extract_strided_slice %39 {offsets = [0, 0, 40], sizes = [2, 16, 8], strides = [1, 1, 1]} : vector<2x16x96xf32> to vector<2x16x8xf32>
    %48 = vector.extract_strided_slice %39 {offsets = [0, 0, 48], sizes = [2, 16, 8], strides = [1, 1, 1]} : vector<2x16x96xf32> to vector<2x16x8xf32>
    %49 = vector.extract_strided_slice %39 {offsets = [0, 0, 56], sizes = [2, 16, 8], strides = [1, 1, 1]} : vector<2x16x96xf32> to vector<2x16x8xf32>
    %50 = tpu.concatenate %46, %47, %48, %49 in 0 : vector<2x16x8xf32>, vector<2x16x8xf32>, vector<2x16x8xf32>, vector<2x16x8xf32> -> vector<8x16x8xf32>
    %51 = arith.truncf %50 : vector<8x16x8xf32> to vector<8x16x8xbf16>
    %52 = vector.extract_strided_slice %39 {offsets = [0, 0, 64], sizes = [2, 16, 8], strides = [1, 1, 1]} : vector<2x16x96xf32> to vector<2x16x8xf32>
    %53 = vector.extract_strided_slice %39 {offsets = [0, 0, 72], sizes = [2, 16, 8], strides = [1, 1, 1]} : vector<2x16x96xf32> to vector<2x16x8xf32>
    %54 = vector.extract_strided_slice %39 {offsets = [0, 0, 80], sizes = [2, 16, 8], strides = [1, 1, 1]} : vector<2x16x96xf32> to vector<2x16x8xf32>
    %55 = vector.extract_strided_slice %39 {offsets = [0, 0, 88], sizes = [2, 16, 8], strides = [1, 1, 1]} : vector<2x16x96xf32> to vector<2x16x8xf32>
    %56 = tpu.concatenate %52, %53, %54, %55 in 0 : vector<2x16x8xf32>, vector<2x16x8xf32>, vector<2x16x8xf32>, vector<2x16x8xf32> -> vector<8x16x8xf32>
    %57 = arith.truncf %56 : vector<8x16x8xf32> to vector<8x16x8xbf16>
    "tpu.trace_start"() <{level = 10 : i32, message = "bqd,bkd->bqk"}> : () -> ()
    %cst_17 = arith.constant dense<0.000000e+00> : vector<8x16x16xf32>
    %58 = tpu.matmul %45, %51, %cst_17 {dimension_numbers = #tpu.dot_dimension_numbers<[2], [2], [1], [1], [0, 0, 0, 1, 1, 1], [0], [0]>} : vector<8x16x8xbf16>, vector<8x16x8xbf16>, vector<8x16x16xf32> -> vector<8x16x16xf32>
    "tpu.trace_stop"() : () -> ()
    %59 = tpu.iota {dimensions = array<i32: 2>} : vector<8x16x16xi32>
    %c10_i32 = arith.constant 10 : i32
    %60 = vector.broadcast %c10_i32 : i32 to vector<8x16x16xi32>
    %61 = arith.cmpi slt, %59, %60 : vector<8x16x16xi32>
    %cst_18 = arith.constant -1.000000e+30 : f32
    %62 = vector.broadcast %cst_18 : f32 to vector<8x16x16xf32>
    %63 = arith.select %61, %58, %62 : vector<8x16x16xi1>, vector<8x16x16xf32>
    %cst_19 = arith.constant dense<0xFF800000> : vector<8x16xf32>
    %64 = vector.multi_reduction <maximumf>, %63, %cst_19 [2] : vector<8x16x16xf32> to vector<8x16xf32>
    %65 = vector.shape_cast %64 : vector<8x16xf32> to vector<8x16x1xf32>
    %66 = vector.broadcast %65 : vector<8x16x1xf32> to vector<8x16x16xf32>
    %67 = arith.subf %63, %66 : vector<8x16x16xf32>
    %68 = math.exp %67 : vector<8x16x16xf32>
    %cst_20 = arith.constant dense<0.000000e+00> : vector<8x16xf32>
    %69 = vector.multi_reduction <add>, %68, %cst_20 [2] : vector<8x16x16xf32> to vector<8x16xf32>
    %70 = vector.shape_cast %69 : vector<8x16xf32> to vector<8x16x1xf32>
    %71 = tpu.reciprocal %70 {approx = true} : vector<8x16x1xf32> -> vector<8x16x1xf32>
    %72 = vector.broadcast %71 : vector<8x16x1xf32> to vector<8x16x16xf32>
    %73 = arith.mulf %68, %72 : vector<8x16x16xf32>
    %74 = arith.truncf %73 : vector<8x16x16xf32> to vector<8x16x16xbf16>
    "tpu.trace_start"() <{level = 10 : i32, message = "bqk,bkd->bqd"}> : () -> ()
    %cst_21 = arith.constant dense<0.000000e+00> : vector<8x16x8xf32>
    %75 = tpu.matmul %74, %57, %cst_21 {dimension_numbers = #tpu.dot_dimension_numbers<[2], [1], [1], [2], [0, 0, 0, 1, 1, 2], [0], [0]>} : vector<8x16x16xbf16>, vector<8x16x8xbf16>, vector<8x16x8xf32> -> vector<8x16x8xf32>
    "tpu.trace_stop"() : () -> ()
    %76 = vector.shape_cast %75 : vector<8x16x8xf32> to vector<4x2x16x8xf32>
    %77 = vector.extract_strided_slice %76 {offsets = [0, 0, 0, 0], sizes = [1, 2, 16, 8], strides = [1, 1, 1, 1]} : vector<4x2x16x8xf32> to vector<1x2x16x8xf32>
    %78 = vector.shape_cast %77 : vector<1x2x16x8xf32> to vector<2x16x8xf32>
    %79 = vector.extract_strided_slice %76 {offsets = [1, 0, 0, 0], sizes = [1, 2, 16, 8], strides = [1, 1, 1, 1]} : vector<4x2x16x8xf32> to vector<1x2x16x8xf32>
    %80 = vector.shape_cast %79 : vector<1x2x16x8xf32> to vector<2x16x8xf32>
    %81 = vector.extract_strided_slice %76 {offsets = [2, 0, 0, 0], sizes = [1, 2, 16, 8], strides = [1, 1, 1, 1]} : vector<4x2x16x8xf32> to vector<1x2x16x8xf32>
    %82 = vector.shape_cast %81 : vector<1x2x16x8xf32> to vector<2x16x8xf32>
    %83 = vector.extract_strided_slice %76 {offsets = [3, 0, 0, 0], sizes = [1, 2, 16, 8], strides = [1, 1, 1, 1]} : vector<4x2x16x8xf32> to vector<1x2x16x8xf32>
    %84 = vector.shape_cast %83 : vector<1x2x16x8xf32> to vector<2x16x8xf32>
    %85 = tpu.concatenate %78, %80, %82, %84 in 2 : vector<2x16x8xf32>, vector<2x16x8xf32>, vector<2x16x8xf32>, vector<2x16x8xf32> -> vector<2x16x32xf32>
    %86 = vector.shape_cast %85 : vector<2x16x32xf32> to vector<32x32xf32>
    %87 = arith.truncf %86 : vector<32x32xf32> to vector<32x32xbf16>
    %c0_22 = arith.constant 0 : index
    %c0_23 = arith.constant 0 : index
    %c0_24 = arith.constant 0 : index
    %88 = vector.load %arg7[%c0_22, %c0_23, %c0_24] : memref<1x32x32xbf16, #tpu.memory_space<vmem>>, vector<1x32x32xbf16>
    %89 = vector.shape_cast %88 : vector<1x32x32xbf16> to vector<32x32xbf16>
    %cst_25 = arith.constant dense<0.000000e+00> : vector<32x32xf32>
    %90 = tpu.matmul %87, %89, %cst_25 {dimension_numbers = #tpu.dot_dimension_numbers<[1], [0], [0], [1], [0, 0, 1, 1], [], []>} : vector<32x32xbf16>, vector<32x32xbf16>, vector<32x32xf32> -> vector<32x32xf32>
    %c0_26 = arith.constant 0 : index
    %c0_27 = arith.constant 0 : index
    %c0_28 = arith.constant 0 : index
    %91 = vector.load %arg8[%c0_26, %c0_27, %c0_28] : memref<1x1x32xf32, #tpu.memory_space<vmem>>, vector<1x1x32xf32>
    %92 = vector.shape_cast %91 : vector<1x1x32xf32> to vector<1x32xf32>
    %93 = vector.broadcast %92 : vector<1x32xf32> to vector<32x32xf32>
    %94 = arith.addf %90, %93 : vector<32x32xf32>
    %95 = arith.addf %94, %4 : vector<32x32xf32>
    %c0_29 = arith.constant 0 : index
    %c0_30 = arith.constant 0 : index
    %c0_31 = arith.constant 0 : index
    %96 = vector.load %arg9[%c0_29, %c0_30, %c0_31] : memref<1x2x32xf32, #tpu.memory_space<vmem>>, vector<1x2x32xf32>
    %97 = vector.shape_cast %96 : vector<1x2x32xf32> to vector<2x32xf32>
    %98 = vector.extract_strided_slice %97 {offsets = [0, 0], sizes = [1, 32], strides = [1, 1]} : vector<2x32xf32> to vector<1x32xf32>
    %99 = vector.extract_strided_slice %97 {offsets = [1, 0], sizes = [1, 32], strides = [1, 1]} : vector<2x32xf32> to vector<1x32xf32>
    %cst_32 = arith.constant dense<0.000000e+00> : vector<32xf32>
    %100 = vector.multi_reduction <add>, %95, %cst_32 [1] : vector<32x32xf32> to vector<32xf32>
    %101 = vector.shape_cast %100 : vector<32xf32> to vector<32x1xf32>
    %cst_33 = arith.constant 3.200000e+01 : f32
    %102 = vector.broadcast %cst_33 : f32 to vector<32x1xf32>
    %103 = arith.divf %101, %102 : vector<32x1xf32>
    %104 = vector.broadcast %103 : vector<32x1xf32> to vector<32x32xf32>
    %105 = arith.subf %95, %104 : vector<32x32xf32>
    %106 = arith.mulf %105, %105 : vector<32x32xf32>
    %cst_34 = arith.constant dense<0.000000e+00> : vector<32xf32>
    %107 = vector.multi_reduction <add>, %106, %cst_34 [1] : vector<32x32xf32> to vector<32xf32>
    %108 = vector.shape_cast %107 : vector<32xf32> to vector<32x1xf32>
    %cst_35 = arith.constant 3.200000e+01 : f32
    %109 = vector.broadcast %cst_35 : f32 to vector<32x1xf32>
    %110 = arith.divf %108, %109 : vector<32x1xf32>
    %111 = vector.broadcast %103 : vector<32x1xf32> to vector<32x32xf32>
    %112 = arith.subf %95, %111 : vector<32x32xf32>
    %cst_36 = arith.constant 9.99999974E-6 : f32
    %113 = vector.broadcast %cst_36 : f32 to vector<32x1xf32>
    %114 = arith.addf %110, %113 : vector<32x1xf32>
    %115 = math.rsqrt %114 : vector<32x1xf32>
    %116 = vector.broadcast %115 : vector<32x1xf32> to vector<32x32xf32>
    %117 = arith.mulf %112, %116 : vector<32x32xf32>
    %118 = vector.broadcast %98 : vector<1x32xf32> to vector<32x32xf32>
    %119 = arith.mulf %117, %118 : vector<32x32xf32>
    %120 = vector.broadcast %99 : vector<1x32xf32> to vector<32x32xf32>
    %121 = arith.addf %119, %120 : vector<32x32xf32>
    %122 = arith.truncf %121 : vector<32x32xf32> to vector<32x32xbf16>
    %c0_37 = arith.constant 0 : index
    %c0_38 = arith.constant 0 : index
    %c0_39 = arith.constant 0 : index
    %123 = vector.load %arg10[%c0_37, %c0_38, %c0_39] : memref<1x32x64xbf16, #tpu.memory_space<vmem>>, vector<1x32x64xbf16>
    %124 = vector.shape_cast %123 : vector<1x32x64xbf16> to vector<32x64xbf16>
    %cst_40 = arith.constant dense<0.000000e+00> : vector<32x64xf32>
    %125 = tpu.matmul %122, %124, %cst_40 {dimension_numbers = #tpu.dot_dimension_numbers<[1], [0], [0], [1], [0, 0, 1, 1], [], []>} : vector<32x32xbf16>, vector<32x64xbf16>, vector<32x64xf32> -> vector<32x64xf32>
    %c0_41 = arith.constant 0 : index
    %c0_42 = arith.constant 0 : index
    %c0_43 = arith.constant 0 : index
    %126 = vector.load %arg11[%c0_41, %c0_42, %c0_43] : memref<1x1x64xf32, #tpu.memory_space<vmem>>, vector<1x1x64xf32>
    %127 = vector.shape_cast %126 : vector<1x1x64xf32> to vector<1x64xf32>
    %128 = vector.broadcast %127 : vector<1x64xf32> to vector<32x64xf32>
    %129 = arith.addf %125, %128 : vector<32x64xf32>
    %cst_44 = arith.constant 5.000000e-01 : f32
    %130 = vector.broadcast %cst_44 : f32 to vector<32x64xf32>
    %131 = arith.mulf %130, %129 : vector<32x64xf32>
    %cst_45 = arith.constant 0.707106769 : f32
    %132 = vector.broadcast %cst_45 : f32 to vector<32x64xf32>
    %133 = arith.mulf %129, %132 : vector<32x64xf32>
    %134 = math.erf %133 : vector<32x64xf32>
    %cst_46 = arith.constant 1.000000e+00 : f32
    %135 = vector.broadcast %cst_46 : f32 to vector<32x64xf32>
    %136 = arith.addf %135, %134 : vector<32x64xf32>
    %137 = arith.mulf %131, %136 : vector<32x64xf32>
    %138 = arith.truncf %137 : vector<32x64xf32> to vector<32x64xbf16>
    %c0_47 = arith.constant 0 : index
    %c0_48 = arith.constant 0 : index
    %c0_49 = arith.constant 0 : index
    %139 = vector.load %arg12[%c0_47, %c0_48, %c0_49] : memref<1x64x32xbf16, #tpu.memory_space<vmem>>, vector<1x64x32xbf16>
    %140 = vector.shape_cast %139 : vector<1x64x32xbf16> to vector<64x32xbf16>
    %cst_50 = arith.constant dense<0.000000e+00> : vector<32x32xf32>
    %141 = tpu.matmul %138, %140, %cst_50 {dimension_numbers = #tpu.dot_dimension_numbers<[1], [0], [0], [1], [0, 0, 1, 1], [], []>} : vector<32x64xbf16>, vector<64x32xbf16>, vector<32x32xf32> -> vector<32x32xf32>
    %c0_51 = arith.constant 0 : index
    %c0_52 = arith.constant 0 : index
    %c0_53 = arith.constant 0 : index
    %142 = vector.load %arg13[%c0_51, %c0_52, %c0_53] : memref<1x1x32xf32, #tpu.memory_space<vmem>>, vector<1x1x32xf32>
    %143 = vector.shape_cast %142 : vector<1x1x32xf32> to vector<1x32xf32>
    %144 = vector.broadcast %143 : vector<1x32xf32> to vector<32x32xf32>
    %145 = arith.addf %141, %144 : vector<32x32xf32>
    %146 = arith.addf %145, %95 : vector<32x32xf32>
    %147 = vector.shape_cast %146 : vector<32x32xf32> to vector<2x16x32xf32>
    %c0_54 = arith.constant 0 : index
    %c0_55 = arith.constant 0 : index
    %c0_56 = arith.constant 0 : index
    %148 = vector.load %arg17[%c0_54, %c0_55, %c0_56] : memref<2x16x32xf32, #tpu.memory_space<vmem>>, vector<2x16x32xf32>
    tpu.vector_store %arg17[%c0_54, %c0_55, %c0_56], %147 {strides = array<i32>} : memref<2x16x32xf32, #tpu.memory_space<vmem>>, vector<2x16x32xf32>,
    %c0_57 = arith.constant 0 : index
    %c0_58 = arith.constant 0 : index
    %c0_59 = arith.constant 0 : index
    %c0_60 = arith.constant 0 : index
    %149 = vector.load %arg16[%c0_57, %c0_58, %c0_59, %c0_60] : memref<1x2x16x32xf32, #tpu.memory_space<vmem>>, vector<1x2x16x32xf32>
    %150 = vector.shape_cast %149 : vector<1x2x16x32xf32> to vector<2x16x32xf32>
    %151 = vector.shape_cast %147 : vector<2x16x32xf32> to vector<1x2x16x32xf32>
    tpu.vector_store %arg16[%c0_57, %c0_58, %c0_59, %c0_60], %151 {strides = array<i32>} : memref<1x2x16x32xf32, #tpu.memory_space<vmem>>, vector<1x2x16x32xf32>,
    %c1_i32 = arith.constant 1 : i32
    %152 = arith.cmpi eq, %arg1, %c1_i32 : i32
    %153 = arith.extui %152 : i1 to i32
    %c0_i32_61 = arith.constant 0 : i32
    %154 = arith.cmpi ne, %153, %c0_i32_61 : i32
    scf.if %154 {
      %c0_62 = arith.constant 0 : index
      %c0_63 = arith.constant 0 : index
      %155 = vector.load %arg14[%c0_62, %c0_63] : memref<2x32xf32, #tpu.memory_space<vmem>>, vector<2x32xf32>
      %156 = vector.extract_strided_slice %155 {offsets = [0, 0], sizes = [1, 32], strides = [1, 1]} : vector<2x32xf32> to vector<1x32xf32>
      %157 = vector.extract_strided_slice %155 {offsets = [1, 0], sizes = [1, 32], strides = [1, 1]} : vector<2x32xf32> to vector<1x32xf32>
      %cst_64 = arith.constant dense<0.000000e+00> : vector<32xf32>
      %158 = vector.multi_reduction <add>, %146, %cst_64 [1] : vector<32x32xf32> to vector<32xf32>
      %159 = vector.shape_cast %158 : vector<32xf32> to vector<32x1xf32>
      %cst_65 = arith.constant 3.200000e+01 : f32
      %160 = vector.broadcast %cst_65 : f32 to vector<32x1xf32>
      %161 = arith.divf %159, %160 : vector<32x1xf32>
      %162 = vector.broadcast %161 : vector<32x1xf32> to vector<32x32xf32>
      %163 = arith.subf %146, %162 : vector<32x32xf32>
      %164 = arith.mulf %163, %163 : vector<32x32xf32>
      %cst_66 = arith.constant dense<0.000000e+00> : vector<32xf32>
      %165 = vector.multi_reduction <add>, %164, %cst_66 [1] : vector<32x32xf32> to vector<32xf32>
      %166 = vector.shape_cast %165 : vector<32xf32> to vector<32x1xf32>
      %cst_67 = arith.constant 3.200000e+01 : f32
      %167 = vector.broadcast %cst_67 : f32 to vector<32x1xf32>
      %168 = arith.divf %166, %167 : vector<32x1xf32>
      %169 = vector.broadcast %161 : vector<32x1xf32> to vector<32x32xf32>
      %170 = arith.subf %146, %169 : vector<32x32xf32>
      %cst_68 = arith.constant 9.99999974E-6 : f32
      %171 = vector.broadcast %cst_68 : f32 to vector<32x1xf32>
      %172 = arith.addf %168, %171 : vector<32x1xf32>
      %173 = math.rsqrt %172 : vector<32x1xf32>
      %174 = vector.broadcast %173 : vector<32x1xf32> to vector<32x32xf32>
      %175 = arith.mulf %170, %174 : vector<32x32xf32>
      %176 = vector.broadcast %156 : vector<1x32xf32> to vector<32x32xf32>
      %177 = arith.mulf %175, %176 : vector<32x32xf32>
      %178 = vector.broadcast %157 : vector<1x32xf32> to vector<32x32xf32>
      %179 = arith.addf %177, %178 : vector<32x32xf32>
      %180 = vector.shape_cast %179 : vector<32x32xf32> to vector<2x16x32xf32>
      %c0_69 = arith.constant 0 : index
      %c0_70 = arith.constant 0 : index
      %c0_71 = arith.constant 0 : index
      %181 = vector.load %arg15[%c0_69, %c0_70, %c0_71] : memref<2x16x32xf32, #tpu.memory_space<vmem>>, vector<2x16x32xf32>
      tpu.vector_store %arg15[%c0_69, %c0_70, %c0_71], %180 {strides = array<i32>} : memref<2x16x32xf32, #tpu.memory_space<vmem>>, vector<2x16x32xf32>,
    } else {
    }
    return
  }
  func.func @transform_0(%arg0: i32, %arg1: i32) -> (i32, i32, i32) {
    %c0_i32 = arith.constant 0 : i32
    %c0_i32_0 = arith.constant 0 : i32
    %c0_i32_1 = arith.constant 0 : i32
    return %arg0, %c0_i32, %c0_i32_0 : i32, i32, i32
  }
  func.func @transform_1(%arg0: i32, %arg1: i32) -> (i32, i32) {
    %c0_i32 = arith.constant 0 : i32
    %c0_i32_0 = arith.constant 0 : i32
    %c0_i32_1 = arith.constant 0 : i32
    return %c0_i32, %c0_i32_0 : i32, i32
  }
  func.func @transform_2(%arg0: i32, %arg1: i32) -> (i32, i32, i32) {
    %c0_i32 = arith.constant 0 : i32
    %c0_i32_0 = arith.constant 0 : i32
    %c0_i32_1 = arith.constant 0 : i32
    return %arg1, %c0_i32, %c0_i32_0 : i32, i32, i32
  }
  func.func @transform_3(%arg0: i32, %arg1: i32) -> (i32, i32, i32) {
    %c0_i32 = arith.constant 0 : i32
    %c0_i32_0 = arith.constant 0 : i32
    %c0_i32_1 = arith.constant 0 : i32
    return %arg1, %c0_i32, %c0_i32_0 : i32, i32, i32
  }
  func.func @transform_4(%arg0: i32, %arg1: i32) -> (i32, i32, i32) {
    %c0_i32 = arith.constant 0 : i32
    %c0_i32_0 = arith.constant 0 : i32
    %c0_i32_1 = arith.constant 0 : i32
    return %arg1, %c0_i32, %c0_i32_0 : i32, i32, i32
  }
  func.func @transform_5(%arg0: i32, %arg1: i32) -> (i32, i32, i32) {
    %c0_i32 = arith.constant 0 : i32
    %c0_i32_0 = arith.constant 0 : i32
    %c0_i32_1 = arith.constant 0 : i32
    return %arg1, %c0_i32, %c0_i32_0 : i32, i32, i32
  }
  func.func @transform_6(%arg0: i32, %arg1: i32) -> (i32, i32, i32) {
    %c0_i32 = arith.constant 0 : i32
    %c0_i32_0 = arith.constant 0 : i32
    %c0_i32_1 = arith.constant 0 : i32
    return %arg1, %c0_i32, %c0_i32_0 : i32, i32, i32
  }
  func.func @transform_7(%arg0: i32, %arg1: i32) -> (i32, i32, i32) {
    %c0_i32 = arith.constant 0 : i32
    %c0_i32_0 = arith.constant 0 : i32
    %c0_i32_1 = arith.constant 0 : i32
    return %arg1, %c0_i32, %c0_i32_0 : i32, i32, i32
  }
  func.func @transform_8(%arg0: i32, %arg1: i32) -> (i32, i32, i32) {
    %c0_i32 = arith.constant 0 : i32
    %c0_i32_0 = arith.constant 0 : i32
    %c0_i32_1 = arith.constant 0 : i32
    return %arg1, %c0_i32, %c0_i32_0 : i32, i32, i32
  }
  func.func @transform_9(%arg0: i32, %arg1: i32) -> (i32, i32, i32) {
    %c0_i32 = arith.constant 0 : i32
    %c0_i32_0 = arith.constant 0 : i32
    %c0_i32_1 = arith.constant 0 : i32
    return %arg1, %c0_i32, %c0_i32_0 : i32, i32, i32
  }
  func.func @transform_10(%arg0: i32, %arg1: i32) -> (i32, i32, i32) {
    %c0_i32 = arith.constant 0 : i32
    %c0_i32_0 = arith.constant 0 : i32
    %c0_i32_1 = arith.constant 0 : i32
    return %arg1, %c0_i32, %c0_i32_0 : i32, i32, i32
  }
  func.func @transform_11(%arg0: i32, %arg1: i32) -> (i32, i32, i32) {
    %c0_i32 = arith.constant 0 : i32
    %c0_i32_0 = arith.constant 0 : i32
    %c0_i32_1 = arith.constant 0 : i32
    return %arg1, %c0_i32, %c0_i32_0 : i32, i32, i32
  }
  func.func @transform_12(%arg0: i32, %arg1: i32) -> (i32, i32) {
    %c0_i32 = arith.constant 0 : i32
    %c0_i32_0 = arith.constant 0 : i32
    %c0_i32_1 = arith.constant 0 : i32
    return %c0_i32, %c0_i32_0 : i32, i32
  }
  func.func @transform_13(%arg0: i32, %arg1: i32) -> (i32, i32, i32) {
    %c0_i32 = arith.constant 0 : i32
    %c0_i32_0 = arith.constant 0 : i32
    %c0_i32_1 = arith.constant 0 : i32
    return %arg0, %c0_i32, %c0_i32_0 : i32, i32, i32
  }
  func.func @transform_14(%arg0: i32, %arg1: i32) -> (i32, i32, i32, i32) {
    %c0_i32 = arith.constant 0 : i32
    %c0_i32_0 = arith.constant 0 : i32
    %c0_i32_1 = arith.constant 0 : i32
    return %arg1, %arg0, %c0_i32, %c0_i32_0 : i32, i32, i32, i32
  }
}

</mosaic_0001>

<bundles_post_ra>
// kernel: tpu_custom_call.1
= control target key start
LH: loop header
LB: loop body
LE: loop exit
PB: predicated region body
PF: predicated region fallthrough
CT: control target
= control target key end

     0   :  { %s4030_s0 = inlined_call_operand.vmem [shape: f32[2,16,32], index: 0, kind: input, shape index: {}]   ;;  %s4031_s1 = inlined_call_operand.hbm [shape: f32[16,32], index: 1, kind: input, shape index: {}]   ;;  %s4032_s2 = inlined_call_operand.hbm [shape: f32[2,2,32], index: 2, kind: input, shape index: {}]   ;;  %s4033_s3 = inlined_call_operand.vmem [shape: bf16[2,32,96], index: 3, kind: input, shape index: {}]   ;;  %s4034_s4 = inlined_call_operand.hbm [shape: f32[2,1,96], index: 4, kind: input, shape index: {}]   ;;  %s4035_s5 = inlined_call_operand.vmem [shape: bf16[2,32,32], index: 5, kind: input, shape index: {}]   ;;  %s4036_s6 = inlined_call_operand.hbm [shape: f32[2,1,32], index: 6, kind: input, shape index: {}]   ;;  %s4037_s7 = inlined_call_operand.vmem [shape: f32[2,2,32], index: 7, kind: input, shape index: {}]   ;;  %s4038_s8 = inlined_call_operand.hbm [shape: bf16[2,32,64], index: 8, kind: input, shape index: {}]   ;;  %s4039_s9 = inlined_call_operand.vmem [shape: f32[2,1,64], index: 9, kind: input, shape index: {}]   ;;  %s4040_s10 = inlined_call_operand.vmem [shape: bf16[2,64,32], index: 10, kind: input, shape index: {}]   ;;  %s4041_s11 = inlined_call_operand.vmem [shape: f32[2,1,32], index: 11, kind: input, shape index: {}]   ;;  %s4042_s12 = inlined_call_operand.vmem [shape: f32[2,32], index: 12, kind: input, shape index: {}]   ;;  %s4043_s13 = inlined_call_operand.hbm [shape: f32[2,16,32], index: 13, kind: output, shape index: {0}]   ;;  %s4044_s14 = inlined_call_operand.hbm [shape: f32[2,2,16,32], index: 14, kind: output, shape index: {1}]  }
   0x1   :  { %4056 = sst [smem:[#allocation28_spill]] %s4030_s0 }
   0x2   :  { %4057 = sst [smem:[#allocation29_spill]] %s4031_s1 }
   0x3   :  { %4058 = sst [smem:[#allocation30_spill]] %s4032_s2 }
   0x4   :  { %4059 = sst [smem:[#allocation31_spill]] %s4033_s3 }
   0x5   :  { %4060 = sst [smem:[#allocation32_spill]] %s4034_s4 }
   0x6   :  { %4061 = sst [smem:[#allocation33_spill]] %s4036_s6 }
   0x7   :  { %4062 = sst [smem:[#allocation34_spill]] %s4038_s8 }
   0x8   :  { %4063 = sst [smem:[#allocation35_spill]] %s4040_s10 }
   0x9   :  { %4064 = sst [smem:[#allocation36_spill]] %s4041_s11 }
   0xa   :  { %4065 = sst [smem:[#allocation37_spill]] %s4042_s12 }
   0xb   :  { %4066 = sst [smem:[#allocation38_spill]] %s4043_s13 }
   0xc   :  { %4067 = sst [smem:[#allocation39_spill]] %s4044_s14 }
   0xd   :  { %20 = vsyncpa [#allocation4], 0 }
   0xe   :  { %21 = vsyncpa [#allocation7], 0 }
   0xf   :  { %23 = vsyncpa [#allocation7 + $0x1], 0 }
  0x10   :  { %24 = vsyncpa [#allocation10], 0 }
  0x11   :  { %26 = vsyncpa [#allocation10 + $0x1], 0 }
  0x12   :  { %27 = vsyncpa [#allocation5], 0 }
  0x13   :  { %28 = vsyncpa [#allocation14], 0 }
  0x14   :  { %30 = vsyncpa [#allocation14 + $0x1], 0  ;;  %s3280_s29 = smov 0   ;;  %s3282_s30 = smov 0  }
  0x15   :  { %s3284_s15 = smov 0   ;;  %s3286_s16 = smov 0  }
  0x16   :  { %s3288_s17 = smov 0   ;;  %s3290_s18 = smov 0  }
  0x17 LB: > { %4068 = sst [smem:[#allocation20_spill]] %s3167_s29  ;;  %s45_s19 = sadd.s32 1, %s3183_s17  ;;  %s3187_s18 = sphi %s3290_s18, %s36_s18   ;;  %s3183_s17 = sphi %s3288_s17, %s4105_s17   ;;  %s3179_s16 = sphi %s3286_s16, %s4104_s16   ;;  %s3175_s15 = sphi %s3284_s15, %s4103_s15   ;;  %s3171_s30 = sphi %s3282_s30, %s4107_s30   ;;  %s3167_s29 = sphi %s3280_s29, %s4106_s29  }
  0x18   : > { %4069 = sst [smem:[#allocation21_spill]] %s3175_s15  ;;  %s102_s20 = sadd.s32 1, %s3175_s15 }
  0x19   : > { %4070 = sst [smem:[#allocation22_spill]] %s3183_s17  ;;  %p46_p0 = scmp.ge.s32.totalorder %s45_s19, 2 }
  0x1a   : > { %4071 = sst [smem:[#allocation23_spill]] %s3187_s18  ;;  %p109_p1 = scmp.ne.s32.totalorder %s3175_s15, %s3171_s30 }
  0x1b   : > { %p110_p2 = scmp.eq.s32.totalorder %s3187_s18, 0  ;;  %p2528_p3 = scmp.ge.s32.totalorder %s3187_s18, 2 }
  0x1c   : > { %s4109_s19 = smov (%p46_p0, %s45_s19), 0  ;;  %p2680_p5 = scmp.lt.s32.totalorder %s3187_s18, 2 }
  0x1d   : > { %4072 = sst [smem:[#allocation24_spill]] %s4109_s19  ;;  %p3321_p4 = por %p110_p2, %p109_p1 }
  0x1e   : > { %s99_s22 = ssub.s32 %s3183_s17, %s4109_s19  ;;  %s475_s23 = sand.u32 1, %s3187_s18  }
  0x1f   : > { %p100_p6 = scmp.eq.s32.totalorder %s99_s22, 0  ;;  %s3330_s24 = sand.u32 1, %s3175_s15  }
  0x20   : > { %s2530_s25 = sshll.u32 %s3183_s17, 1  ;;  %s2529_s27 = sshll.u32 %s3330_s24, 1 }
  0x21   : > { %s3334_s26 = scalar_select %p100_p6, %s3175_s15, %s102_s20  }
  0x22   : > { %s4075_s2 = sld [smem:[#allocation30_spill]]  ;;  %s479_s19 = scalar_lea.vmem [#allocation6], %s2529_s27 }
  0x23   : > { %4074 = sst [smem:[#allocation25_spill]] %s3334_s26  ;;  %s487_s0 = sshll.u32 %s479_s19, 4  ;;  %s488_s0 = int_to_ptr.vmem [resolvable:$true] %s487_s0 }
  0x24   : > { %p3344_p7 = pnand %p2680_p5, %p3321_p4  ;;  %s3349_s14 = scalar_lea.sflag [#allocation7], %s475_s23 }
  0x25   : > { %s4077_s6 = sld [smem:[#allocation33_spill]]  ;;  %s530_s21 = scalar_lea.vmem [#allocation9], %s3330_s24 }
  0x26   : > { %s537_s27 = sshll.u32 %s530_s21, 4  ;;  %s3365_s20 = sadd.s32 4294967295, %s3187_s18   ;;  %s538_s27 = int_to_ptr.vmem [resolvable:$true] %s537_s27 }
  0x27   : > { %p115_p8 = scmp.ne.s32.totalorder %s3171_s30, %s3167_s29  ;;  %p116_p9 = scmp.eq.s32.totalorder %s3365_s20, 0 }
  0x28   : > { %s483_s13 = scalar_lea.hbm %s4075_s2, %s2530_s25  ;;  %s3359_s2 = scalar_lea.sflag [#allocation10], %s475_s23 }
  0x29   : > { %s485_s12 = sshll.u32 %s483_s13, 4  ;;  %p422_p10 = scmp.eq.s32.totalorder %s3365_s20, 1  ;;  %s486_s12 = int_to_ptr.hbm [resolvable:$true] %s485_s12 }
  0x2a   : > { %2665 = dma.hbm_to_vmem [thread:$0]  (!%p3344_p7), %s486_s12, 32, %s488_s0, %s3349_s14  }
  0x2b   : > { %s533_s25 = scalar_lea.hbm %s4077_s6, %s3183_s17  ;;  %s2524_s0 = sadd.s32 4294967294, %s3187_s18  }
  0x2c   : > { %s535_s28 = sshll.u32 %s533_s25, 4  ;;  %p428_p11 = scmp.eq.s32.totalorder %s2524_s0, 1  ;;  %s536_s28 = int_to_ptr.hbm [resolvable:$true] %s535_s28 }
  0x2d   : > { %2671 = dma.hbm_to_vmem [thread:$0]  (!%p3344_p7), %s536_s28, 16, %s538_s27, %s3359_s2  }
  0x2e   : > { %p2525_p12 = scmp.ge.s32.totalorder %s3187_s18, 1  ;;  %p3375_p13 = por %p116_p9, %p115_p8 }
  0x2f   : > { %p3384_p0 = por %p422_p10, %p109_p1  ;;  %p3388_p2 = por %p428_p11, %p115_p8 }
  0x30   : > { %p435_p4 = scmp.lt.s32.totalorder %s3187_s18, 3  ;;  %s4083_s1 = sld [smem:[#allocation29_spill]] }
  0x31   : > { %s4079_s23 = scalar_select %p3384_p0, 1, 0 }
  0x32   : > { %s4081_s13 = scalar_select %p3388_p2, 1, 0 }
  0x33   : > { %4080 = sst [smem:[#allocation26_spill]] %s4079_s23  ;;  %p3396_p5 = pnand %p2525_p12, %p435_p4 }
  0x34   : > { %4082 = sst [smem:[#allocation27_spill]] %s4081_s13  ;;  %s3189_s28 = smov [#allocation3]  }
  0x35   : > { %p2658_p1 = pneg %p3396_p5  ;;  %s458_s0 = sshll.u32 %s3189_s28, 4  ;;  %s459_s0 = int_to_ptr.vmem [resolvable:$true] %s458_s0 }
  0x36   : > { %s456_s21 = sshll.u32 %s4083_s1, 4  ;;  %s4085_s4 = sld [smem:[#allocation32_spill]]  ;;  %s457_s21 = int_to_ptr.hbm [resolvable:$true] %s456_s21 }
  0x37   : > { %p2659_p6 = pnand %p2658_p1, %p116_p9  ;;  %s505_s1 = scalar_lea.vmem [#allocation8], %s3330_s24 }
  0x38   : > { %s512_s26 = sshll.u32 %s505_s1, 4  ;;  %s3190_s18 = smov 128   ;;  %s513_s26 = int_to_ptr.vmem [resolvable:$true] %s512_s26 }
  0x39   : > { %s3191_s13 = smov 8   ;;  %s2623_s28 = sshll.u32 %s3183_s17, 4 }
  0x3a   : > { %2661 = dma.hbm_to_vmem [thread:$0]  (!%p2659_p6), %s457_s21, 256, %s459_s0, [#allocation4], %s3190_s18, %s3190_s18, %s3191_s13  }
  0x3b   : > { %s4086_s8 = sld [smem:[#allocation34_spill]]  ;;  %s4087_s11 = sshll.u32 %s3330_s24, 4 }
  0x3c   : > { %s508_s25 = scalar_lea.hbm %s4085_s4, %s3183_s17  ;;  %s555_s6 = scalar_lea.vmem [#allocation11], %s4087_s11 }
  0x3d   : > { %s510_s15 = sshll.u32 %s508_s25, 4  ;;  %s563_s19 = sshll.u32 %s555_s6, 4  ;;  %s511_s15 = int_to_ptr.hbm [resolvable:$true] %s510_s15  ;;  %s564_s19 = int_to_ptr.vmem [resolvable:$true] %s563_s19 }
  0x3e   : > { %2668 = dma.hbm_to_vmem [thread:$0]  (!%p3344_p7), %s511_s15, 16, %s513_s26, %s3349_s14  }
  0x3f   : > { %s3192_s1 = smov 64   ;;  %s3193_s25 = smov 4  }
  0x40   : > { %595 = sbr.rel (%p3396_p5) target bundleno = 2568 (0xa08), region = 72 }
  0x41   : > { %s560_s10 = scalar_lea.hbm %s4086_s8, %s2623_s28 }
  0x42   : > { %s561_s4 = sshll.u32 %s560_s10, 4  ;;  %s562_s4 = int_to_ptr.hbm [resolvable:$true] %s561_s4 }
  0x43   : > { %2674 = dma.hbm_to_vmem [thread:$0]  (!%p3344_p7), %s562_s4, 256, %s564_s19, %s3359_s2, %s3192_s1, %s3192_s1, %s3193_s25  }
  0x45   : > { %3146 = dma.done.wait (%p116_p9), [#allocation4], 256  }
  0x46   : > { %3148 = vsyncadd (%p116_p9), [#allocation4], 4294967040  ;;  %s602_s11 = sand.u32 1, %s3365_s20   ;;  %s3429_s10 = sand.u32 1, %s3171_s30  }
  0x47   : > { %s2536_s29 = sshll.u32 %s3429_s10, 1  ;;  %s603_s15 = scalar_lea.sflag [#allocation7], %s602_s11 }
  0x48   : > { %s3432_s18 = scalar_lea.vmem [#allocation6], %s2536_s29 }
  0x49   : > { %3150 = dma.done.wait (%p3375_p13), %s603_s15, 48  }
  0x4a   : > { %3152 = vsyncadd (%p3375_p13), %s603_s15, 4294967248  ;;  %s622_s4 = scalar_lea.sflag [#allocation10], %s602_s11 }
  0x4b   : > { %3154 = dma.done.wait (%p3375_p13), %s622_s4, 272  }
  0x4c   : > { %3156 = vsyncadd (%p3375_p13), %s622_s4, 4294967024  ;;  %s2537_s26 = sshll.u32 %s3429_s10, 4  ;;  %s2538_s22 = sshll.u32 %s3429_s10, 5 }
  0x4d   : > { %p731_p7 = scmp.lt.s32.totalorder %s3179_s16, 1  ;;  %s4088_s3 = sld [smem:[#allocation31_spill]] }
  0x4e   : > { %s4089_s21 = sld [smem:[#allocation36_spill]]  ;;  %s3483_s28 = scalar_lea.vmem [#allocation13], %s2538_s22 }
  0x4f   : > { %s3448_s14 = scalar_select %p731_p7, %s3179_s16, 1 }
  0x50   : > { %s4090_s17 = sld [smem:[#allocation35_spill]]  ;;  %p2546_p8 = scmp.ne.s32.totalorder %s3179_s16, 0 }
  0x51   : > { %s2624_s23 = sshll.u32 %s3448_s14, 4  ;;  %s2543_s13 = sshll.u32 %s3448_s14, 1 }
  0x52   : > { %s3460_s6 = scalar_lea.vmem %s4035_s5, %s2624_s23  ;;  %s3465_s25 = scalar_lea.vmem %s4037_s7, %s2543_s13 }
  0x53   : > { %s3455_s12 = scalar_lea.vmem %s4088_s3, %s2624_s23  ;;  %s747_s15 = scalar_lea.vmem %s4039_s9, %s3448_s14 }
  0x54   : > { %s2626_s4 = sshll.u32 %s3448_s14, 5  ;;  %s755_s27 = scalar_lea.vmem %s4089_s21, %s3448_s14 }
  0x55   : > { %s3481_s23 = scalar_lea.vmem [#allocation11], %s2537_s26  ;;  %762 = sbr.rel (%p2546_p8) target bundleno = 99 (0x63), region = 96 }
  0x56   : > { %s3479_s0 = scalar_lea.vmem %s4090_s17, %s2626_s4  ;;  %s4091_s1 = sld [smem:[#allocation28_spill]] (!%p2546_p8) }
  0x5a   : > { %v767_v1 = vld [vmem:[#allocation3] sm:$0xff]  ;;  %vm773_vm0 = vcmask 261120   ;;  %v768_v4 = vld [vmem:[#allocation3 + $0x8] sm:$0xff] }
  0x5c   : > { %v763_v0 = vld [vmem:[%s4091_s1] sm:$0xff]  ;;  %v764_v2 = vld [vmem:[%s4091_s1 + $0x8] sm:$0xff]  ;;  %v765_v5 = vld [vmem:[%s4091_s1 + $0x10] sm:$0xff] }
  0x5d   : > { %v769_v3 = vadd.f32 %v767_v1, %v763_v0  ;;  %v766_v6 = vld [vmem:[%s4091_s1 + $0x18] sm:$0xff]  ;;  %v770_v7 = vadd.f32 %v768_v4, %v764_v2  ;;  %v771_v8 = vadd.f32 %v767_v1, %v765_v5 }
  0x5e   : > { %v772_v9 = vadd.f32 %v768_v4, %v766_v6 }
  0x5f   : > { %774 = vst.msk [vmem:[#allocation2] sm:$0xff] %vm773_vm0, %v769_v3 }
  0x60   : > { %775 = vst.msk [vmem:[#allocation2 + $0x8] sm:$0xff] %vm773_vm0, %v770_v7 }
  0x61   : > { %776 = vst.msk [vmem:[#allocation2 + $0x10] sm:$0xff] %vm773_vm0, %v771_v8 }
  0x62   : > { %777 = vst.msk [vmem:[#allocation2 + $0x18] sm:$0xff] %vm773_vm0, %v772_v9 }
  0x63 PF: > { %vm783_vm1 = vcmask 261120   ;;  %v3194_v18 = vmov 32.0   ;;  %v2628_v45 = vld [vmem:[%s3455_s12 + $0x8] sm:$0xff]  ;;  %v2627_v50 = vld [vmem:[%s3455_s12] sm:$0xff]  ;;  %s3195_s22 = smov 120   ;;  %s3196_s12 = smov 112  }
  0x64   : > { %2813 = vrcp.f32 %v3194_v18  ;;  %923 = vmatpush.bf16.msra.mxu0 %v2628_v45  ;;  %2638 = vmatpush.bf16.msra.mxu1 %v2628_v45  ;;  %s3197_s11 = smov 96   ;;  %s3198_s29 = smov 104   ;;  %vm999_vm15 = vcmask 64512  }
  0x65   : > { %s3199_s4 = smov 64   ;;  %s3200_s21 = smov 8  }
  0x66   : > { %v778_v11 = vld [vmem:[#allocation2] sm:$0xff]  ;;  %s3201_s13 = smov 16   ;;  %s3202_s19 = smov 24  }
  0x67   : > { %v784_v13 = vsel %vm783_vm1, %v778_v11, 0.0  ;;  %v779_v15 = vld [vmem:[#allocation2 + $0x8] sm:$0xff]  ;;  %p2615_p9 = scmp.ne.s32.totalorder %s3179_s16, 1 }
  0x68   : > { %v780_v10 = vld [vmem:[#allocation2 + $0x10] sm:$0xff]  ;;  %785 = vadd.xlane.f32.xlu0 %v784_v13  ;;  %v787_v17 = vsel %vm783_vm1, %v779_v15, 0.0  ;;  %924 = vmatpush.bf16.msra.mxu0 %v2627_v50  ;;  %s4095_s24 = sld [smem:[#allocation37_spill]] (!%p2615_p9) }
  0x69   : > { %v790_v12 = vsel %vm783_vm1, %v780_v10, 0.0  ;;  %v781_v14 = vld [vmem:[#allocation2 + $0x18] sm:$0xff]  ;;  %2639 = vmatpush.bf16.msra.mxu1 %v2627_v50 }
  0x6a   : > { %791 = vadd.xlane.f32.xlu1 %v790_v12  ;;  %v793_v16 = vsel %vm783_vm1, %v781_v14, 0.0  ;;  %v2814_v19 = vpop.eup %2813 }
  0x6b   : > { %v797_v20 = vmul.f32 32.0, %v2814_v19  ;;  %vm801_vm2 = vweird.f32 %v2814_v19 }
  0x6d   : > { %v798_v21 = vsub.f32 1.0, %v797_v20 }
  0x6f   : > { %v799_v22 = vmul.f32 %v2814_v19, %v798_v21 }
  0x70   : > { %788 = vadd.xlane.f32.xlu0 %v787_v17 }
  0x71   : > { %v800_v23 = vadd.f32 %v2814_v19, %v799_v22 }
  0x72   : > { %794 = vadd.xlane.f32.xlu1 %v793_v16 }
  0x73   : > { %v3502_v24 = vsel %vm801_vm2, %v2814_v19, %v800_v23  ;;  %vm1228_vm2 = vcmask 130048  }
  0xdb   : > { %v786_v26 = vpop.xlane.xlu0 %785 }
  0xdc   : > { %v803_v28 = vmul.f32 %v3502_v24, %v786_v26 }
  0xdd   : > { %v792_v25 = vpop.xlane.xlu1 %791 }
  0xde   : > { %v805_v27 = vmul.f32 %v3502_v24, %v792_v25  ;;  %v3508_v30 = vsub.f32 %v778_v11, %v803_v28 }
  0xe0   : > { %v3506_v29 = vsub.f32 %v780_v10, %v805_v27  ;;  %v811_v32 = vmul.f32 %v3508_v30, %v3508_v30 }
  0xe2   : > { %v813_v31 = vmul.f32 %v3506_v29, %v3506_v29  ;;  %v815_v34 = vsel %vm783_vm1, %v811_v32, 0.0 }
  0xe3   : > { %816 = vadd.xlane.f32.xlu2 %v815_v34  ;;  %v789_v36 = vpop.xlane.xlu0 %788 }
  0xe4   : > { %v821_v33 = vsel %vm783_vm1, %v813_v31, 0.0  ;;  %v804_v38 = vmul.f32 %v3502_v24, %v789_v36 }
  0xe5   : > { %v795_v35 = vpop.xlane.xlu1 %794  ;;  %822 = vadd.xlane.f32.xlu0 %v821_v33 }
  0xe6   : > { %v806_v37 = vmul.f32 %v3502_v24, %v795_v35  ;;  %v3520_v40 = vsub.f32 %v779_v15, %v804_v38  ;;  %v782_v15 = vld [vmem:[%s3432_s18] sm:$0x3]  ;;  %s4092_s18 = scalar_lea.vmem [#allocation8], %s3429_s10 }
  0xe7   : > { %v879_v21 = vperm.slane %v782_v15, 0  ;;  %v884_v31 = vperm.slane %v782_v15, 1 }
  0xe8   : > { %v3518_v39 = vsub.f32 %v781_v14, %v806_v37  ;;  %v812_v42 = vmul.f32 %v3520_v40, %v3520_v40 }
  0xea   : > { %v814_v41 = vmul.f32 %v3518_v39, %v3518_v39  ;;  %v818_v44 = vsel %vm783_vm1, %v812_v42, 0.0 }
  0xeb   : > { %819 = vadd.xlane.f32.xlu2 %v818_v44  ;;  %v2809_v44 = vld [vmem:[%s4092_s18] ss:$0 sm:$0xff] }
  0xec   : > { %v824_v43 = vsel %vm783_vm1, %v814_v41, 0.0 }
  0xed   : > { %825 = vadd.xlane.f32.xlu1 %v824_v43 }
 0x156   : > { %v817_v46 = vpop.xlane.xlu2 %816 }
 0x157   : > { %v827_v48 = vmul.f32 %v817_v46, %v3502_v24 }
 0x158   : > { %v823_v47 = vpop.xlane.xlu0 %822 }
 0x159   : > { %v829_v49 = vmul.f32 %v823_v47, %v3502_v24  ;;  %v831_v51 = vadd.f32 1e-05, %v827_v48 }
 0x15b   : > { %v833_v52 = vadd.f32 1e-05, %v829_v49  ;;  %2815 = vrsqrt.f32 %v831_v51  ;;  %vm841_vm6 = vweird.f32 %v831_v51 }
 0x15d   : > { %2817 = vrsqrt.f32 %v833_v52  ;;  %vm861_vm3 = vweird.f32 %v833_v52 }
 0x15e   : > { %v820_v54 = vpop.xlane.xlu2 %819 }
 0x15f   : > { %v828_v56 = vmul.f32 %v820_v54, %v3502_v24 }
 0x160   : > { %v826_v53 = vpop.xlane.xlu1 %825 }
 0x161   : > { %v830_v55 = vmul.f32 %v826_v53, %v3502_v24  ;;  %v2816_v57 = vpop.eup %2815  ;;  %v832_v59 = vadd.f32 1e-05, %v828_v56 }
 0x162   : > { %v836_v61 = vmul.f32 %v2816_v57, %v831_v51  ;;  %vm842_vm5 = vweird.f32 %v2816_v57 }
 0x163   : > { %v834_v58 = vadd.f32 1e-05, %v830_v55  ;;  %v2818_v60 = vpop.eup %2817  ;;  %vm843_vm8 = vmor %vm841_vm6, %vm842_vm5  ;;  %vm851_vm13 = vweird.f32 %v832_v59 }
 0x164   : > { %v856_v62 = vmul.f32 %v2818_v60, %v833_v52  ;;  %v837_v63 = vmul.f32 %v2816_v57, %v836_v61  ;;  %vm862_vm4 = vweird.f32 %v2818_v60 }
 0x165   : > { %2819 = vrsqrt.f32 %v834_v58  ;;  %vm863_vm7 = vmor %vm861_vm3, %vm862_vm4  ;;  %vm871_vm9 = vweird.f32 %v834_v58  ;;  %vm1677_vm3 = vcmask 195584  }
 0x166   : > { %2821 = vrsqrt.f32 %v832_v59  ;;  %v857_v0 = vmul.f32 %v2818_v60, %v856_v62  ;;  %v838_v1 = vmul.f32 0.5, %v837_v63 }
 0x168   : > { %v858_v2 = vmul.f32 0.5, %v857_v0  ;;  %v839_v3 = vsub.f32 1.5, %v838_v1 }
 0x16a   : > { %v859_v5 = vsub.f32 1.5, %v858_v2  ;;  %v840_v8 = vmul.f32 %v2816_v57, %v839_v3 }
 0x16b   : > { %v2820_v4 = vpop.eup %2819 }
 0x16c   : > { %v2822_v6 = vpop.eup %2821  ;;  %v866_v7 = vmul.f32 %v2820_v4, %v834_v58  ;;  %v860_v9 = vmul.f32 %v2818_v60, %v859_v5  ;;  %v844_v16 = vsel %vm843_vm8, %v2816_v57, %v840_v8  ;;  %vm872_vm10 = vweird.f32 %v2820_v4 }
 0x16d   : > { %v846_v10 = vmul.f32 %v2822_v6, %v832_v59  ;;  %vm852_vm11 = vweird.f32 %v2822_v6  ;;  %v875_v22 = vmul.f32 %v844_v16, %v3508_v30  ;;  %vm873_vm12 = vmor %vm871_vm9, %vm872_vm10 }
 0x16e   : > { %v867_v11 = vmul.f32 %v2820_v4, %v866_v7  ;;  %v864_v13 = vsel %vm863_vm7, %v2818_v60, %v860_v9  ;;  %vm853_vm14 = vmor %vm851_vm13, %vm852_vm11 }
 0x16f   : > { %v847_v12 = vmul.f32 %v2822_v6, %v846_v10  ;;  %v877_v19 = vmul.f32 %v864_v13, %v3506_v29  ;;  %v880_v29 = vmul.f32 %v879_v21, %v875_v22 }
 0x170   : > { %v868_v14 = vmul.f32 0.5, %v867_v11 }
 0x171   : > { %v848_v17 = vmul.f32 0.5, %v847_v12  ;;  %v882_v32 = vmul.f32 %v879_v21, %v877_v19  ;;  %v885_v30 = vadd.f32 %v884_v31, %v880_v29 }
 0x172   : > { %v869_v18 = vsub.f32 1.5, %v868_v14 }
 0x173   : > { %v849_v20 = vsub.f32 1.5, %v848_v17  ;;  %v887_v36 = vadd.f32 %v884_v31, %v882_v32 }
 0x174   : > { %v870_v23 = vmul.f32 %v2820_v4, %v869_v18 }
 0x175   : > { %v850_v25 = vmul.f32 %v2822_v6, %v849_v20 }
 0x176   : > { %v874_v26 = vsel %vm873_vm12, %v2820_v4, %v870_v23 }
 0x177   : > { %v878_v27 = vmul.f32 %v874_v26, %v3518_v39  ;;  %v854_v28 = vsel %vm853_vm14, %v2822_v6, %v850_v25 }
 0x178   : > { %v876_v33 = vmul.f32 %v854_v28, %v3520_v40 }
 0x179   : > { %v883_v34 = vmul.f32 %v879_v21, %v878_v27 }
 0x17a   : > { %v881_v35 = vmul.f32 %v879_v21, %v876_v33 }
 0x17b   : > { %v888_v37 = vadd.f32 %v884_v31, %v883_v34 }
 0x17c   : > { %v886_v38 = vadd.f32 %v884_v31, %v881_v35 }
 0x17d   : > { %v890_v41 = vpack.c.bf16 %v888_v37, %v887_v36 }
 0x17e   : > { %v889_v42 = vpack.c.bf16 %v886_v38, %v885_v30 }
 0x17f   : > { %2556 = vmatmul.msk.bf16.vlgmr.msra.gmra.mxu1 %vm783_vm1, %v890_v41 }
 0x180   : > { %2555 = vmatmul.msk.bf16.vlgmr.msra.gmra.mxu0 %vm783_vm1, %v889_v42 }
 0x1fc   : > { %v931_v39 = vpop.f32.mrf.mxu1 }
 0x1fd   : > { %v926_v43 = vpop.f32.mrf.mxu0  ;;  %v932_v46 = vadd.f32 %v2809_v44, %v931_v39 }
 0x1fe   : > { %v927_v48 = vadd.f32 %v2809_v44, %v926_v43 }
 0x1ff   : > { %v978_v53 = vpack.c.bf16 %v932_v46, %v932_v46 }
 0x200   : > { %v976_v58 = vpack.c.bf16 %v927_v48, %v927_v48 }
 0x201   : > { %v1022_v55 = vunpack.c.l.b16 %v978_v53 }
 0x202   : > { %v994_v60 = vunpack.c.l.b16 %v976_v58 }
 0x204   : > { %v933_v45 = vpop.f32.mrf.mxu1 }
 0x205   : > { %v928_v40 = vpop.f32.mrf.mxu0  ;;  %v934_v47 = vadd.f32 %v2809_v44, %v933_v45 }
 0x206   : > { %v929_v49 = vadd.f32 %v2809_v44, %v928_v40 }
 0x207   : > { %v2759_v50 = vpack.i.bf16 %v934_v47, %v932_v46  ;;  %v979_v51 = vpack.c.bf16 %v934_v47, %v934_v47 }
 0x208   : > { %v2754_v52 = vpack.i.bf16 %v929_v49, %v927_v48  ;;  %v977_v57 = vpack.c.bf16 %v929_v49, %v929_v49 }
 0x209   : > { %2760 = vrot.lane.b32.xlu1 %v2759_v50, %s3195_s22  ;;  %v1023_v54 = vunpack.c.l.b16 %v979_v51 }
 0x20a   : > { %2755 = vrot.lane.b32.xlu0 %v2754_v52, %s3196_s12  ;;  %2750 = vrot.lane.b32.xlu2 %v2754_v52, %s3195_s22  ;;  %v995_v59 = vunpack.c.l.b16 %v977_v57 }
 0x20b   : > { %v3543_v56 = vpack.c.b16 %v1023_v54, %v1022_v55 }
 0x20c   : > { %v3547_v61 = vpack.c.b16 %v995_v59, %v994_v60 }
 0x211   : > { %1025 = vrot.lane.b32.xlu1 %v3543_v56, %s3197_s11 }
 0x212   : > { %2765 = vrot.lane.b32.xlu2 %v2754_v52, %s3198_s29  ;;  %2770 = vrot.lane.b32.xlu0 %v2759_v50, %s3196_s12 }
 0x21a   : > { %2775 = vrot.lane.b32.xlu2 %v2759_v50, %s3198_s29  ;;  %997 = vrot.lane.b32.xlu0 %v3547_v61, %s3197_s11 }
 0x264   : > { %v2751_v62 = vpop.permute.xlu2 %2750 }
 0x265   : > { %v2753_v63 = vunpack.i.h.bf16 %v2751_v62  ;;  %v2752_v0 = vunpack.i.l.bf16 %v2751_v62 }
 0x267   : > { %v981_v1 = vpack.c.bf16 %v2753_v63, %v2753_v63  ;;  %v980_v2 = vpack.c.bf16 %v2752_v0, %v2752_v0 }
 0x269   : > { %v1050_v3 = vunpack.c.l.b16 %v981_v1  ;;  %v1049_v4 = vunpack.c.l.b16 %v980_v2  ;;  %v1209_v2 = vlaneseq }
 0x26b   : > { %v3551_v5 = vpack.c.b16 %v1050_v3, %v1049_v4  ;;  %v3600_v4 = vand.u32 127, %v1209_v2 }
 0x26c   : > { %v2766_v6 = vpop.permute.xlu2 %2765 }
 0x26d   : > { %v2768_v7 = vunpack.i.h.bf16 %v2766_v6  ;;  %v2767_v8 = vunpack.i.l.bf16 %v2766_v6  ;;  %1052 = vrot.lane.b32.xlu2 %v3551_v5, %s3197_s11  ;;  %vm1211_vm0 = vcmp.lt.s32.totalorder %v3600_v4, 10 }
 0x26f   : > { %v989_v9 = vpack.c.bf16 %v2768_v7, %v2768_v7  ;;  %v988_v10 = vpack.c.bf16 %v2767_v8, %v2767_v8 }
 0x271   : > { %v1158_v11 = vunpack.c.l.b16 %v989_v9  ;;  %v1157_v12 = vunpack.c.l.b16 %v988_v10 }
 0x273   : > { %v3555_v13 = vpack.c.b16 %v1158_v11, %v1157_v12 }
 0x274   : > { %v2776_v14 = vpop.permute.xlu2 %2775 }
 0x275   : > { %1160 = vrot.lane.b32.xlu2 %v3555_v13, %s3197_s11  ;;  %v2778_v21 = vunpack.i.h.bf16 %v2776_v14  ;;  %v2777_v22 = vunpack.i.l.bf16 %v2776_v14 }
 0x277   : > { %v991_v29 = vpack.c.bf16 %v2778_v21, %v2778_v21  ;;  %v990_v34 = vpack.c.bf16 %v2777_v22, %v2777_v22 }
 0x279   : > { %v1185_v39 = vunpack.c.l.b16 %v991_v29  ;;  %v1184_v43 = vunpack.c.l.b16 %v990_v34 }
 0x27b   : > { %v2761_v15 = vpop.permute.xlu1 %2760  ;;  %v3569_v47 = vpack.c.b16 %v1185_v39, %v1184_v43 }
 0x27c   : > { %v2763_v16 = vunpack.i.h.bf16 %v2761_v15  ;;  %v2762_v17 = vunpack.i.l.bf16 %v2761_v15  ;;  %v2756_v18 = vpop.permute.xlu0 %2755 }
 0x27d   : > { %v2758_v19 = vunpack.i.h.bf16 %v2756_v18  ;;  %v2757_v20 = vunpack.i.l.bf16 %v2756_v18  ;;  %1451 = vrot.lane.b32.xlu2 %v3543_v56, %s3199_s4 }
 0x27e   : > { %v983_v23 = vpack.c.bf16 %v2763_v16, %v2763_v16  ;;  %v982_v25 = vpack.c.bf16 %v2762_v17, %v2762_v17 }
 0x27f   : > { %v985_v26 = vpack.c.bf16 %v2758_v19, %v2758_v19  ;;  %v984_v27 = vpack.c.bf16 %v2757_v20, %v2757_v20 }
 0x280   : > { %v1077_v28 = vunpack.c.l.b16 %v983_v23  ;;  %v1076_v31 = vunpack.c.l.b16 %v982_v25 }
 0x281   : > { %v1104_v32 = vunpack.c.l.b16 %v985_v26  ;;  %v1103_v33 = vunpack.c.l.b16 %v984_v27 }
 0x282   : > { %v3561_v35 = vpack.c.b16 %v1077_v28, %v1076_v31 }
 0x283   : > { %v1026_v36 = vpop.permute.xlu1 %1025  ;;  %v1105_v37 = vpack.c.b16 %v1104_v32, %v1103_v33 }
 0x284   : > { %v2771_v30 = vpop.permute.xlu0 %2770  ;;  %1079 = vrot.lane.b32.xlu0 %v3561_v35, %s3197_s11  ;;  %v1031_v38 = vsel %vm999_vm15, %v1026_v36, 0 }
 0x285   : > { %v2773_v41 = vunpack.i.h.bf16 %v2771_v30  ;;  %v2772_v42 = vunpack.i.l.bf16 %v2771_v30  ;;  %1476 = vrot.lane.b32.xlu2 %v3551_v5, %s3199_s4  ;;  %1106 = vrot.lane.b32.xlu1 %v1105_v37, %s3197_s11 }
 0x286   : > { %1040 = vmatpush.bf16.xpose.msra.mxu2 %v1031_v38 }
 0x287   : > { %v987_v44 = vpack.c.bf16 %v2773_v41, %v2773_v41  ;;  %v986_v45 = vpack.c.bf16 %v2772_v42, %v2772_v42 }
 0x289   : > { %v1131_v46 = vunpack.c.l.b16 %v987_v44  ;;  %v1130_v40 = vunpack.c.l.b16 %v986_v45 }
 0x28b   : > { %v3571_v48 = vpack.c.b16 %v1131_v46, %v1130_v40 }
 0x28c   : > { %v998_v49 = vpop.permute.xlu0 %997  ;;  %1187 = vrot.lane.b32.xlu0 %v3569_v47, %s3197_s11 }
 0x28d   : > { %2558 = vmatmul.msk.bf16.vlgmr.msra.gmra.mxu2 %vm999_vm15, %v3543_v56  ;;  %1133 = vrot.lane.b32.xlu1 %v3571_v48, %s3197_s11  ;;  %v1004_v50 = vsel %vm999_vm15, %v998_v49, 0 }
 0x28e   : > { %1013 = vmatpush.bf16.xpose.msrb.mxu1 %v1004_v50 }
 0x294   : > { %1426 = vrot.lane.b32.xlu0 %v3547_v61, %s3199_s4 }
 0x295   : > { %2557 = vmatmul.msk.bf16.vlgmr.msrb.gmra.mxu1 %vm999_vm15, %v3547_v61  ;;  %1526 = vrot.lane.b32.xlu1 %v1105_v37, %s3199_s4 }
 0x2c7   : > { %v1053_v51 = vpop.permute.xlu2 %1052 }
 0x2c8   : > { %v1058_v52 = vsel %vm999_vm15, %v1053_v51, 0 }
 0x2c9   : > { %1067 = vmatpush.bf16.xpose.msra.mxu3 %v1058_v52 }
 0x2cf   : > { %v1161_v53 = vpop.permute.xlu2 %1160 }
 0x2d0   : > { %2559 = vmatmul.msk.bf16.vlgmr.msra.gmra.mxu3 %vm999_vm15, %v3551_v5  ;;  %v1166_v54 = vsel %vm999_vm15, %v1161_v53, 0 }
 0x2d1   : > { %1175 = vmatpush.bf16.xpose.msrb.mxu0 %v1166_v54 }
 0x2d7   : > { %v1452_v55 = vpop.permute.xlu2 %1451 }
 0x2d8   : > { %2563 = vmatmul.msk.bf16.vlgmr.msrb.gmra.mxu0 %vm999_vm15, %v3555_v13 }
 0x2df   : > { %v1477_v56 = vpop.permute.xlu2 %1476 }
 0x2e0   : > { %1489 = vmatpush.bf16.msra.mxu0 %v1477_v56 }
 0x2f6   : > { %v1080_v57 = vpop.permute.xlu0 %1079 }
 0x2f7   : > { %v1085_v58 = vsel %vm999_vm15, %v1080_v57, 0  ;;  %v1107_v59 = vpop.permute.xlu1 %1106 }
 0x2f8   : > { %1094 = vmatpush.bf16.xpose.msra.mxu1 %v1085_v58  ;;  %v1112_v60 = vsel %vm999_vm15, %v1107_v59, 0 }
 0x2f9   : > { %1121 = vmatpush.bf16.xpose.msrb.mxu2 %v1112_v60 }
 0x2fe   : > { %v1188_v61 = vpop.permute.xlu0 %1187 }
 0x2ff   : > { %v1193_v62 = vsel %vm999_vm15, %v1188_v61, 0  ;;  %v1134_v63 = vpop.permute.xlu1 %1133  ;;  %2560 = vmatmul.msk.bf16.vlgmr.msra.gmra.mxu1 %vm999_vm15, %v3561_v35 }
 0x300   : > { %2561 = vmatmul.msk.bf16.vlgmr.msrb.gmra.mxu2 %vm999_vm15, %v1105_v37  ;;  %v1139_v0 = vsel %vm999_vm15, %v1134_v63, 0  ;;  %1202 = vmatpush.bf16.xpose.msrb.mxu1 %v1193_v62 }
 0x301   : > { %1148 = vmatpush.bf16.xpose.msrb.mxu3 %v1139_v0 }
 0x306   : > { %v1427_v1 = vpop.permute.xlu0 %1426 }
 0x307   : > { %v1527_v3 = vpop.permute.xlu1 %1526  ;;  %1439 = vmatpush.bf16.msra.mxu2 %v1427_v1 }
 0x308   : > { %2562 = vmatmul.msk.bf16.vlgmr.msrb.gmra.mxu3 %vm999_vm15, %v3571_v48 }
 0x309   : > { %1464 = vmatpush.bf16.msra.mxu3 %v1452_v55 }
 0x30b   : > { %1539 = vmatpush.bf16.msrb.mxu2 %v1527_v3 }
 0x30f   : > { %2564 = vmatmul.msk.bf16.vlgmr.msrb.gmra.mxu1 %vm999_vm15, %v3569_v47 }
 0x310   : > { %v1042_v5 = vpop.f32.mrf.mxu2 }
 0x311   : > { %v1214_v6 = vsel %vm1211_vm0, %v1042_v5, -1e+30 }
 0x312   : > { %v1015_v7 = vpop.f32.mrf.mxu1  ;;  %v1235_v8 = vsel %vm1228_vm2, %v1214_v6, -inf }
 0x313   : > { %v1212_v9 = vsel %vm1211_vm0, %v1015_v7, -1e+30  ;;  %1236 = vmax.xlane.f32.xlu1 %v1235_v8 }
 0x314   : > { %v1229_v10 = vsel %vm1228_vm2, %v1212_v9, -inf }
 0x315   : > { %1230 = vmax.xlane.f32.xlu2 %v1229_v10 }
 0x318   : > { %v1044_v11 = vpop.f32.mrf.mxu2 }
 0x319   : > { %v1215_v12 = vsel %vm1211_vm0, %v1044_v11, -1e+30 }
 0x31a   : > { %v1017_v14 = vpop.f32.mrf.mxu1  ;;  %v1238_v15 = vsel %vm1228_vm2, %v1215_v12, -inf }
 0x31b   : > { %v1213_v16 = vsel %vm1211_vm0, %v1017_v14, -1e+30  ;;  %1239 = vmax.xlane.f32.xlu0 %v1238_v15 }
 0x31c   : > { %v1232_v17 = vsel %vm1228_vm2, %v1213_v16, -inf }
 0x31d   : > { %1233 = vmax.xlane.f32.xlu1 %v1232_v17 }
 0x353   : > { %v1069_v25 = vpop.f32.mrf.mxu3 }
 0x354   : > { %v3631_v26 = vsel %vm1211_vm0, %v1069_v25, -1e+30 }
 0x355   : > { %v1177_v18 = vpop.f32.mrf.mxu0  ;;  %v1241_v33 = vsel %vm1228_vm2, %v3631_v26, -inf }
 0x356   : > { %v3619_v19 = vsel %vm1211_vm0, %v1177_v18, -1e+30 }
 0x357   : > { %v1265_v20 = vsel %vm1228_vm2, %v3619_v19, -inf }
 0x358   : > { %1266 = vmax.xlane.f32.xlu1 %v1265_v20 }
 0x35b   : > { %v1071_v44 = vpop.f32.mrf.mxu3 }
 0x35c   : > { %v3655_v51 = vsel %vm1211_vm0, %v1071_v44, -1e+30 }
 0x35d   : > { %v1179_v29 = vpop.f32.mrf.mxu0  ;;  %v1244_v57 = vsel %vm1228_vm2, %v3655_v51, -inf }
 0x35e   : > { %v3647_v38 = vsel %vm1211_vm0, %v1179_v29, -1e+30 }
 0x35f   : > { %v1268_v43 = vsel %vm1228_vm2, %v3647_v38, -inf }
 0x37c   : > { %v1096_v21 = vpop.f32.mrf.mxu1 }
 0x37d   : > { %v3625_v22 = vsel %vm1211_vm0, %v1096_v21, -1e+30 }
 0x37e   : > { %v1247_v23 = vsel %vm1228_vm2, %v3625_v22, -inf }
 0x37f   : > { %1248 = vmax.xlane.f32.xlu0 %v1247_v23 }
 0x383   : > { %v1123_v27 = vpop.f32.mrf.mxu2 }
 0x384   : > { %v3635_v28 = vsel %vm1211_vm0, %v1123_v27, -1e+30  ;;  %v1098_v31 = vpop.f32.mrf.mxu1 }
 0x385   : > { %v1253_v32 = vsel %vm1228_vm2, %v3635_v28, -inf  ;;  %v3643_v30 = vsel %vm1211_vm0, %v1098_v31, -1e+30 }
 0x386   : > { %1254 = vmax.xlane.f32.xlu2 %v1253_v32  ;;  %v1237_v34 = vpop.xlane.xlu1 %1236  ;;  %v1250_v39 = vsel %vm1228_vm2, %v3643_v30, -inf }
 0x387   : > { %1242 = vmax.xlane.f32.xlu0 %v1241_v33  ;;  %v1279_v42 = vsub.f32 %v1214_v6, %v1237_v34 }
 0x388   : > { %v1231_v36 = vpop.xlane.xlu2 %1230 }
 0x389   : > { %v1277_v37 = vsub.f32 %v1212_v9, %v1231_v36  ;;  %v1297_v46 = vmul.f32 1.442695, %v1279_v42 }
 0x38b   : > { %v1293_v41 = vmul.f32 1.442695, %v1277_v37  ;;  %v1125_v58 = vpop.f32.mrf.mxu2  ;;  %v1150_v0 = vpop.f32.mrf.mxu3 }
 0x38c   : > { %v1204_v45 = vpop.f32.mrf.mxu1  ;;  %v3671_v61 = vsel %vm1211_vm0, %v1125_v58, -1e+30  ;;  %v3687_v6 = vsel %vm1211_vm0, %v1150_v0, -1e+30 }
 0x38d   : > { %2823 = vpow2.f32 %v1293_v41  ;;  %v3661_v53 = vsel %vm1211_vm0, %v1204_v45, -1e+30  ;;  %v1256_v1 = vsel %vm1228_vm2, %v3671_v61, -inf  ;;  %v1259_v8 = vsel %vm1228_vm2, %v3687_v6, -inf }
 0x38e   : > { %1251 = vmax.xlane.f32.xlu2 %v1250_v39  ;;  %v1240_v40 = vpop.xlane.xlu0 %1239  ;;  %2825 = vpow2.f32 %v1297_v46  ;;  %v1271_v59 = vsel %vm1228_vm2, %v3661_v53, -inf }
 0x38f   : > { %1269 = vmax.xlane.f32.xlu0 %v1268_v43  ;;  %v1280_v54 = vsub.f32 %v1215_v12, %v1240_v40 }
 0x390   : > { %v1234_v49 = vpop.xlane.xlu1 %1233 }
 0x391   : > { %v1278_v50 = vsub.f32 %v1213_v16, %v1234_v49  ;;  %v1299_v60 = vmul.f32 1.442695, %v1280_v54 }
 0x393   : > { %v3657_v52 = vpop.eup %2823  ;;  %v1295_v55 = vmul.f32 1.442695, %v1278_v50  ;;  %v1152_v9 = vpop.f32.mrf.mxu3 }
 0x394   : > { %v1325_v56 = vsel %vm1228_vm2, %v3657_v52, 0.0  ;;  %v3673_v62 = vpop.eup %2825  ;;  %v1206_v10 = vpop.f32.mrf.mxu1  ;;  %v3695_v11 = vsel %vm1211_vm0, %v1152_v9, -1e+30 }
 0x395   : > { %2827 = vpow2.f32 %v1295_v55  ;;  %1326 = vadd.xlane.f32.xlu1 %v1325_v56  ;;  %v1331_v2 = vsel %vm1228_vm2, %v3673_v62, 0.0  ;;  %v3699_v12 = vsel %vm1211_vm0, %v1206_v10, -1e+30  ;;  %v1262_v14 = vsel %vm1228_vm2, %v3695_v11, -inf }
 0x396   : > { %1245 = vmax.xlane.f32.xlu2 %v1244_v57  ;;  %2829 = vpow2.f32 %v1299_v60  ;;  %v1274_v15 = vsel %vm1228_vm2, %v3699_v12, -inf }
 0x397   : > { %1272 = vmax.xlane.f32.xlu0 %v1271_v59 }
 0x39b   : > { %v3675_v63 = vpop.eup %2827 }
 0x39c   : > { %v1328_v3 = vsel %vm1228_vm2, %v3675_v63, 0.0  ;;  %v3683_v5 = vpop.eup %2829 }
 0x39d   : > { %1257 = vmax.xlane.f32.xlu1 %v1256_v1  ;;  %v1334_v7 = vsel %vm1228_vm2, %v3683_v5, 0.0 }
 0x39e   : > { %1332 = vadd.xlane.f32.xlu2 %v1331_v2 }
 0x39f   : > { %1329 = vadd.xlane.f32.xlu0 %v1328_v3 }
 0x3a5   : > { %1335 = vadd.xlane.f32.xlu1 %v1334_v7 }
 0x3a6   : > { %1260 = vmax.xlane.f32.xlu2 %v1259_v8 }
 0x3ad   : > { %1263 = vmax.xlane.f32.xlu1 %v1262_v14 }
 0x3ae   : > { %1275 = vmax.xlane.f32.xlu2 %v1274_v15 }
 0x3b3   : > { %1501 = vrot.lane.b32.xlu0 %v3561_v35, %s3199_s4 }
 0x3cb   : > { %v1267_v16 = vpop.xlane.xlu1 %1266 }
 0x3cc   : > { %v1289_v17 = vsub.f32 %v3619_v19, %v1267_v16 }
 0x3ce   : > { %v1317_v18 = vmul.f32 1.442695, %v1289_v17 }
 0x3d0   : > { %2831 = vpow2.f32 %v1317_v18 }
 0x3d6   : > { %v3708_v20 = vpop.eup %2831 }
 0x3d7   : > { %v1361_v4 = vsel %vm1228_vm2, %v3708_v20, 0.0 }
 0x3d8   : > { %1362 = vadd.xlane.f32.xlu1 %v1361_v4 }
 0x3f2   : > { %v1249_v21 = vpop.xlane.xlu0 %1248 }
 0x3f3   : > { %v1283_v23 = vsub.f32 %v3625_v22, %v1249_v21 }
 0x3f5   : > { %v1305_v25 = vmul.f32 1.442695, %v1283_v23 }
 0x3f7   : > { %2833 = vpow2.f32 %v1305_v25 }
 0x3f9   : > { %v1255_v27 = vpop.xlane.xlu2 %1254 }
 0x3fa   : > { %v1243_v31 = vpop.xlane.xlu0 %1242  ;;  %v1285_v19 = vsub.f32 %v3635_v28, %v1255_v27 }
 0x3fb   : > { %v1281_v35 = vsub.f32 %v3631_v26, %v1243_v31 }
 0x3fc   : > { %v1309_v34 = vmul.f32 1.442695, %v1285_v19 }
 0x3fd   : > { %v3714_v32 = vpop.eup %2833  ;;  %v1301_v33 = vmul.f32 1.442695, %v1281_v35 }
 0x3fe   : > { %v1343_v29 = vsel %vm1228_vm2, %v3714_v32, 0.0 }
 0x3ff   : > { %2835 = vpow2.f32 %v1301_v33  ;;  %1344 = vadd.xlane.f32.xlu0 %v1343_v29 }
 0x400   : > { %2837 = vpow2.f32 %v1309_v34 }
 0x401   : > { %v1252_v36 = vpop.xlane.xlu2 %1251 }
 0x402   : > { %v1284_v22 = vsub.f32 %v3643_v30, %v1252_v36  ;;  %v1270_v37 = vpop.xlane.xlu0 %1269 }
 0x403   : > { %v1290_v42 = vsub.f32 %v3647_v38, %v1270_v37 }
 0x404   : > { %v1307_v41 = vmul.f32 1.442695, %v1284_v22 }
 0x405   : > { %v3721_v39 = vpop.eup %2835  ;;  %v1319_v28 = vmul.f32 1.442695, %v1290_v42 }
 0x406   : > { %2839 = vpow2.f32 %v1307_v41  ;;  %v1337_v26 = vsel %vm1228_vm2, %v3721_v39, 0.0  ;;  %v3727_v46 = vpop.eup %2837 }
 0x407   : > { %1338 = vadd.xlane.f32.xlu2 %v1337_v26  ;;  %2841 = vpow2.f32 %v1319_v28  ;;  %v1349_v49 = vsel %vm1228_vm2, %v3727_v46, 0.0 }
 0x408   : > { %v1327_v43 = vpop.xlane.xlu1 %1326 }
 0x409   : > { %v1246_v44 = vpop.xlane.xlu2 %1245  ;;  %2843 = vrcp.f32 %v1327_v43 }
 0x40a   : > { %v3725_v45 = vpop.xlane.xlu0 %1272  ;;  %v1282_v38 = vsub.f32 %v3655_v51, %v1246_v44 }
 0x40b   : > { %v1291_v28 = vsub.f32 %v3661_v53, %v3725_v45 }
 0x40c   : > { %v3729_v30 = vpop.eup %2839  ;;  %v1303_v50 = vmul.f32 1.442695, %v1282_v38 }
 0x40d   : > { %v1346_v40 = vsel %vm1228_vm2, %v3729_v30, 0.0  ;;  %v3736_v56 = vpop.eup %2841  ;;  %v1321_v43 = vmul.f32 1.442695, %v1291_v28 }
 0x40e   : > { %1347 = vadd.xlane.f32.xlu1 %v1346_v40  ;;  %v1364_v59 = vsel %vm1228_vm2, %v3736_v56, 0.0 }
 0x40f   : > { %1350 = vadd.xlane.f32.xlu2 %v1349_v49  ;;  %v2844_v58 = vpop.eup %2843 }
 0x410   : > { %v1258_v54 = vpop.xlane.xlu1 %1257  ;;  %v1389_v60 = vmul.f32 %v2844_v58, %v3657_v52 }
 0x411   : > { %v1333_v55 = vpop.xlane.xlu2 %1332  ;;  %v1286_v51 = vsub.f32 %v3671_v61, %v1258_v54 }
 0x412   : > { %2845 = vrcp.f32 %v1333_v55  ;;  %v1330_v57 = vpop.xlane.xlu0 %1329  ;;  %v1405_v9 = vpack.c.bf16 %v1389_v60, %v1389_v60 }
 0x413   : > { %2847 = vrcp.f32 %v1330_v57  ;;  %v1311_v1 = vmul.f32 1.442695, %v1286_v51 }
 0x414   : > { %2849 = vpow2.f32 %v1303_v50  ;;  %v1423_v17 = vunpack.c.l.b16 %v1405_v9 }
 0x416   : > { %1365 = vadd.xlane.f32.xlu1 %v1364_v59 }
 0x418   : > { %v2846_v0 = vpop.eup %2845  ;;  %v1336_v2 = vpop.xlane.xlu1 %1335 }
 0x419   : > { %v2848_v3 = vpop.eup %2847  ;;  %2851 = vrcp.f32 %v1336_v2  ;;  %v1261_v7 = vpop.xlane.xlu2 %1260  ;;  %v1391_v61 = vmul.f32 %v2846_v0, %v3673_v62 }
 0x41a   : > { %v3742_v8 = vpop.eup %2849  ;;  %v1390_v10 = vmul.f32 %v2848_v3, %v3675_v63  ;;  %v1287_v14 = vsub.f32 %v3687_v6, %v1261_v7  ;;  %2853 = vpow2.f32 %v1311_v1 }
 0x41b   : > { %v1340_v52 = vsel %vm1228_vm2, %v3742_v8, 0.0  ;;  %v1407_v21 = vpack.c.bf16 %v1391_v61, %v1391_v61 }
 0x41c   : > { %v1406_v15 = vpack.c.bf16 %v1390_v10, %v1390_v10  ;;  %v1313_v16 = vmul.f32 1.442695, %v1287_v14 }
 0x41d   : > { %v1448_v29 = vunpack.c.l.b16 %v1407_v21 }
 0x41e   : > { %v1424_v18 = vunpack.c.l.b16 %v1406_v15  ;;  %2855 = vpow2.f32 %v1313_v16  ;;  %1341 = vadd.xlane.f32.xlu1 %v1340_v52 }
 0x41f   : > { %v2852_v4 = vpop.eup %2851 }
 0x420   : > { %v1425_v23 = vpack.c.b16 %v1424_v18, %v1423_v17  ;;  %v1392_v25 = vmul.f32 %v2852_v4, %v3683_v5  ;;  %v1264_v63 = vpop.xlane.xlu1 %1263  ;;  %v3751_v31 = vpop.eup %2853 }
 0x421   : > { %v1288_v6 = vsub.f32 %v3695_v11, %v1264_v63  ;;  %v1276_v27 = vpop.xlane.xlu2 %1275  ;;  %v1352_v11 = vsel %vm1228_vm2, %v3751_v31, 0.0 }
 0x422   : > { %v1408_v62 = vpack.c.bf16 %v1392_v25, %v1392_v25  ;;  %2565 = vmatmul.msk.bf16.vlgmr.msra.gmra.mxu2 %vm1228_vm2, %v1425_v23  ;;  %v1292_v19 = vsub.f32 %v3699_v12, %v1276_v27 }
 0x423   : > { %v1315_v35 = vmul.f32 1.442695, %v1288_v6 }
 0x424   : > { %v3755_v33 = vpop.eup %2855  ;;  %v1449_v34 = vunpack.c.l.b16 %v1408_v62  ;;  %v1323_v37 = vmul.f32 1.442695, %v1292_v19 }
 0x425   : > { %2857 = vpow2.f32 %v1315_v35  ;;  %v1355_v5 = vsel %vm1228_vm2, %v3755_v33, 0.0  ;;  %v1502_v36 = vpop.permute.xlu0 %1501 }
 0x426   : > { %v1450_v22 = vpack.c.b16 %v1449_v34, %v1448_v29  ;;  %1356 = vadd.xlane.f32.xlu2 %v1355_v5  ;;  %1353 = vadd.xlane.f32.xlu1 %v1352_v11  ;;  %2859 = vpow2.f32 %v1323_v37 }
 0x427   : > { %1514 = vmatpush.bf16.msra.mxu1 %v1502_v36  ;;  %2861 = vpow2.f32 %v1321_v43 }
 0x428   : > { %2566 = vmatmul.msk.bf16.vlgmr.msra.gmra.mxu3 %vm1228_vm2, %v1450_v22 }
 0x42b   : > { %v3762_v12 = vpop.eup %2857 }
 0x42c   : > { %v1358_v41 = vsel %vm1228_vm2, %v3762_v12, 0.0  ;;  %v3766_v42 = vpop.eup %2859 }
 0x42d   : > { %1359 = vadd.xlane.f32.xlu0 %v1358_v41  ;;  %v1370_v26 = vsel %vm1228_vm2, %v3766_v42, 0.0  ;;  %v3778_v44 = vpop.eup %2861 }
 0x42e   : > { %v1367_v38 = vsel %vm1228_vm2, %v3778_v44, 0.0 }
 0x435   : > { %1371 = vadd.xlane.f32.xlu0 %v1370_v26 }
 0x43e   : > { %1551 = vrot.lane.b32.xlu2 %v3571_v48, %s3199_s4 }
 0x43f   : > { %1576 = vrot.lane.b32.xlu1 %v3555_v13, %s3199_s4 }
 0x446   : > { %1601 = vrot.lane.b32.xlu2 %v3569_v47, %s3199_s4 }
 0x44b   : > { %v1363_v40 = vpop.xlane.xlu1 %1362 }
 0x469   : > { %1368 = vadd.xlane.f32.xlu1 %v1367_v38 }
 0x472   : > { %v1345_v49 = vpop.xlane.xlu0 %1344 }
 0x473   : > { %2863 = vrcp.f32 %v1345_v49 }
 0x479   : > { %v2864_v50 = vpop.eup %2863 }
 0x47a   : > { %v1395_v13 = vmul.f32 %v2864_v50, %v3714_v32  ;;  %v1339_v47 = vpop.xlane.xlu2 %1338 }
 0x47c   : > { %v1411_v55 = vpack.c.bf16 %v1395_v13, %v1395_v13 }
 0x47e   : > { %v1498_v58 = vunpack.c.l.b16 %v1411_v55 }
 0x481   : > { %v1348_v48 = vpop.xlane.xlu1 %1347 }
 0x482   : > { %2865 = vrcp.f32 %v1348_v48  ;;  %v1351_v60 = vpop.xlane.xlu2 %1350 }
 0x483   : > { %2867 = vrcp.f32 %v1339_v47 }
 0x488   : > { %v2866_v54 = vpop.eup %2865 }
 0x489   : > { %v1396_v53 = vmul.f32 %v2866_v54, %v3729_v30  ;;  %v1366_v45 = vpop.xlane.xlu1 %1365  ;;  %v2868_v1 = vpop.eup %2867 }
 0x48a   : > { %v1393_v2 = vmul.f32 %v2868_v1, %v3721_v39 }
 0x48b   : > { %v1412_v57 = vpack.c.bf16 %v1396_v53, %v1396_v53 }
 0x48c   : > { %v1409_v3 = vpack.c.bf16 %v1393_v2, %v1393_v2 }
 0x48d   : > { %v1499_v51 = vunpack.c.l.b16 %v1412_v57 }
 0x48e   : > { %v1473_v61 = vunpack.c.l.b16 %v1409_v3 }
 0x48f   : > { %v1500_v59 = vpack.c.b16 %v1499_v51, %v1498_v58 }
 0x491   : > { %2568 = vmatmul.msk.bf16.vlgmr.msra.gmra.mxu1 %vm1228_vm2, %v1500_v59  ;;  %v1342_v0 = vpop.xlane.xlu1 %1341 }
 0x492   : > { %2869 = vrcp.f32 %v1342_v0 }
 0x493   : > { %2871 = vrcp.f32 %v1351_v60 }
 0x498   : > { %v2870_v32 = vpop.eup %2869 }
 0x499   : > { %v1394_v7 = vmul.f32 %v2870_v32, %v3742_v8  ;;  %v1357_v30 = vpop.xlane.xlu2 %1356  ;;  %v1354_v9 = vpop.xlane.xlu1 %1353 }
 0x49a   : > { %2873 = vrcp.f32 %v1357_v30  ;;  %v2872_v10 = vpop.eup %2871 }
 0x49b   : > { %v1410_v14 = vpack.c.bf16 %v1394_v7, %v1394_v7  ;;  %2875 = vrcp.f32 %v1354_v9  ;;  %v1397_v16 = vmul.f32 %v2872_v10, %v3727_v46 }
 0x49c   : > { %2877 = vrcp.f32 %v1366_v45 }
 0x49d   : > { %v1474_v15 = vunpack.c.l.b16 %v1410_v14  ;;  %2879 = vrcp.f32 %v1363_v40  ;;  %v1413_v8 = vpack.c.bf16 %v1397_v16, %v1397_v16 }
 0x49f   : > { %v1475_v52 = vpack.c.b16 %v1474_v15, %v1473_v61  ;;  %v1523_v46 = vunpack.c.l.b16 %v1413_v8 }
 0x4a0   : > { %v2874_v17 = vpop.eup %2873  ;;  %v1360_v39 = vpop.xlane.xlu0 %1359 }
 0x4a1   : > { %v2876_v18 = vpop.eup %2875  ;;  %2881 = vrcp.f32 %v1360_v39  ;;  %v1552_v4 = vpop.permute.xlu2 %1551  ;;  %2567 = vmatmul.msk.bf16.vlgmr.msra.gmra.mxu0 %vm1228_vm2, %v1475_v52  ;;  %v1399_v25 = vmul.f32 %v2874_v17, %v3755_v33  ;;  %v2630_v52 = vld [vmem:[%s3460_s6 + $0x8] sm:$0xff]  ;;  %v2629_v17 = vld [vmem:[%s3460_s6] sm:$0xff]  ;;  %s4093_s6 = scalar_lea.vmem [#allocation9], %s3429_s10 }
 0x4a2   : > { %v1398_v21 = vmul.f32 %v2876_v18, %v3751_v31  ;;  %1564 = vmatpush.bf16.msrb.mxu3 %v1552_v4  ;;  %v2878_v23 = vpop.eup %2877  ;;  %1716 = vmatpush.bf16.msra.mxu2 %v2630_v52 }
 0x4a3   : > { %v2880_v6 = vpop.eup %2879  ;;  %v1402_v35 = vmul.f32 %v2878_v23, %v3736_v56  ;;  %v1415_v19 = vpack.c.bf16 %v1399_v25, %v1399_v25 }
 0x4a4   : > { %v1414_v63 = vpack.c.bf16 %v1398_v21, %v1398_v21  ;;  %v1401_v5 = vmul.f32 %v2880_v6, %v3708_v20 }
 0x4a5   : > { %v1418_v31 = vpack.c.bf16 %v1402_v35, %v1402_v35  ;;  %v1548_v33 = vunpack.c.l.b16 %v1415_v19  ;;  %v1441_v53 = vpop.f32.mrf.mxu2 }
 0x4a6   : > { %v1524_v27 = vunpack.c.l.b16 %v1414_v63  ;;  %v1417_v37 = vpack.c.bf16 %v1401_v5, %v1401_v5  ;;  %1717 = vmatpush.bf16.msra.mxu2 %v2629_v17 }
 0x4a7   : > { %v2882_v62 = vpop.eup %2881  ;;  %v1574_v26 = vunpack.c.l.b16 %v1418_v31 }
 0x4a8   : > { %v1525_v29 = vpack.c.b16 %v1524_v27, %v1523_v46  ;;  %v1400_v34 = vmul.f32 %v2882_v62, %v3762_v12  ;;  %v1573_v56 = vunpack.c.l.b16 %v1417_v37  ;;  %v1372_v20 = vpop.xlane.xlu0 %1371 }
 0x4a9   : > { %v1602_v36 = vpop.permute.xlu2 %1601  ;;  %2883 = vrcp.f32 %v1372_v20 }
 0x4aa   : > { %v1416_v11 = vpack.c.bf16 %v1400_v34, %v1400_v34  ;;  %2569 = vmatmul.msk.bf16.vlgmr.msrb.gmra.mxu2 %vm1228_vm2, %v1525_v29  ;;  %1614 = vmatpush.bf16.msrb.mxu1 %v1602_v36  ;;  %v1575_v43 = vpack.c.b16 %v1574_v26, %v1573_v56 }
 0x4ab   : > { %v1466_v51 = vpop.f32.mrf.mxu3 }
 0x4ac   : > { %v1549_v22 = vunpack.c.l.b16 %v1416_v11 }
 0x4ad   : > { %v1443_v57 = vpop.f32.mrf.mxu2 }
 0x4ae   : > { %v1550_v41 = vpack.c.b16 %v1549_v22, %v1548_v33 }
 0x4af   : > { %v2884_v38 = vpop.eup %2883 }
 0x4b0   : > { %2570 = vmatmul.msk.bf16.vlgmr.msrb.gmra.mxu3 %vm1228_vm2, %v1550_v41  ;;  %v1404_v40 = vmul.f32 %v2884_v38, %v3766_v42 }
 0x4b1   : > { %v1577_v28 = vpop.permute.xlu1 %1576 }
 0x4b2   : > { %1589 = vmatpush.bf16.msrb.mxu0 %v1577_v28  ;;  %v1420_v48 = vpack.c.bf16 %v1404_v40, %v1404_v40 }
 0x4b3   : > { %v1468_v60 = vpop.f32.mrf.mxu3 }
 0x4b4   : > { %v1599_v47 = vunpack.c.l.b16 %v1420_v48 }
 0x4b5   : > { %2571 = vmatmul.msk.bf16.vlgmr.msrb.gmra.mxu0 %vm1228_vm2, %v1575_v43 }
 0x4dc   : > { %v1369_v12 = vpop.xlane.xlu1 %1368 }
 0x4dd   : > { %2885 = vrcp.f32 %v1369_v12 }
 0x4e3   : > { %v2886_v49 = vpop.eup %2885 }
 0x4e4   : > { %v1403_v50 = vmul.f32 %v2886_v49, %v3778_v44  ;;  %v2810_v49 = vld [vmem:[%s4093_s6] ss:$0 sm:$0xff] }
 0x4e6   : > { %v1419_v13 = vpack.c.bf16 %v1403_v50, %v1403_v50 }
 0x4e8   : > { %v1598_v54 = vunpack.c.l.b16 %v1419_v13  ;;  %v2903_v13 = vld [vmem:[#allocation2] sm:$0xff] }
 0x4ea   : > { %v1600_v55 = vpack.c.b16 %v1599_v47, %v1598_v54 }
 0x4ec   : > { %2572 = vmatmul.msk.bf16.vlgmr.msrb.gmra.mxu1 %vm1228_vm2, %v1600_v55 }
 0x50e   : > { %v1516_v0 = vpop.f32.mrf.mxu1 }
 0x516   : > { %v1518_v7 = vpop.f32.mrf.mxu1 }
 0x517   : > { %v2794_v9 = vpack.i.bf16 %v1518_v7, %v1516_v0 }
 0x51e   : > { %v1491_v45 = vpop.f32.mrf.mxu0 }
 0x526   : > { %v1493_v58 = vpop.f32.mrf.mxu0 }
 0x527   : > { %v2779_v59 = vpack.i.bf16 %v1493_v58, %v1491_v45  ;;  %v2904_v45 = vld [vmem:[#allocation2 + $0x8] sm:$0xff] }
 0x529   : > { %2780 = vrot.lane.b32.xlu1 %v2779_v59, %s3200_s21 }
 0x52d   : > { %v1541_v42 = vpop.f32.mrf.mxu2 }
 0x532   : > { %v1591_v1 = vpop.f32.mrf.mxu0 }
 0x533   : > { %v1566_v32 = vpop.f32.mrf.mxu3 }
 0x535   : > { %v1543_v44 = vpop.f32.mrf.mxu2 }
 0x536   : > { %v2784_v2 = vpack.i.bf16 %v1543_v44, %v1541_v42  ;;  %v2905_v42 = vld [vmem:[#allocation2 + $0x10] sm:$0xff] }
 0x538   : > { %2785 = vrot.lane.b32.xlu2 %v2784_v2, %s3201_s13  ;;  %v2906_v2 = vld [vmem:[#allocation2 + $0x18] sm:$0xff] }
 0x53a   : > { %v1593_v3 = vpop.f32.mrf.mxu0 }
 0x53b   : > { %v2789_v30 = vpack.i.bf16 %v1593_v3, %v1591_v1  ;;  %v1568_v10 = vpop.f32.mrf.mxu3 }
 0x53c   : > { %v2799_v14 = vpack.i.bf16 %v1568_v10, %v1566_v32 }
 0x53d   : > { %2790 = vrot.lane.b32.xlu0 %v2789_v30, %s3202_s19 }
 0x540   : > { %2795 = vrot.lane.b32.xlu2 %v2794_v9, %s3200_s21 }
 0x548   : > { %2800 = vrot.lane.b32.xlu2 %v2799_v14, %s3201_s13 }
 0x569   : > { %v1616_v61 = vpop.f32.mrf.mxu1 }
 0x571   : > { %v1618_v15 = vpop.f32.mrf.mxu1 }
 0x572   : > { %v2804_v16 = vpack.i.bf16 %v1618_v15, %v1616_v61 }
 0x574   : > { %2805 = vrot.lane.b32.xlu1 %v2804_v16, %s3202_s19 }
 0x592   : > { %v2786_v8 = vpop.permute.xlu2 %2785 }
 0x593   : > { %v2788_v25 = vunpack.i.h.bf16 %v2786_v8  ;;  %v2787_v63 = vunpack.i.l.bf16 %v2786_v8 }
 0x59a   : > { %v2796_v5 = vpop.permute.xlu2 %2795 }
 0x59b   : > { %v2781_v39 = vpop.permute.xlu1 %2780  ;;  %v2798_v11 = vunpack.i.h.bf16 %v2796_v5  ;;  %v2797_v31 = vunpack.i.l.bf16 %v2796_v5 }
 0x59c   : > { %v2783_v18 = vunpack.i.h.bf16 %v2781_v39  ;;  %v2782_v4 = vunpack.i.l.bf16 %v2781_v39 }
 0x59d   : > { %v1672_v41 = vsel %vm999_vm15, %v1468_v60, %v2798_v11  ;;  %v1671_v26 = vsel %vm999_vm15, %v1466_v51, %v2797_v31 }
 0x59e   : > { %v1670_v21 = vsel %vm999_vm15, %v1443_v57, %v2783_v18  ;;  %v1669_v23 = vsel %vm999_vm15, %v1441_v53, %v2782_v4 }
 0x59f   : > { %v1673_v62 = vsel %vm1228_vm2, %v1669_v23, %v2787_v63  ;;  %v1674_v35 = vsel %vm1228_vm2, %v1670_v21, %v2788_v25 }
 0x5a2   : > { %v2801_v36 = vpop.permute.xlu2 %2800 }
 0x5a3   : > { %v2803_v33 = vunpack.i.h.bf16 %v2801_v36  ;;  %v2802_v22 = vunpack.i.l.bf16 %v2801_v36 }
 0x5a5   : > { %v1675_v43 = vsel %vm1228_vm2, %v1671_v26, %v2802_v22  ;;  %v1676_v20 = vsel %vm1228_vm2, %v1672_v41, %v2803_v33 }
 0x5af   : > { %v2791_v6 = vpop.permute.xlu0 %2790 }
 0x5b0   : > { %v2793_v46 = vunpack.i.h.bf16 %v2791_v6  ;;  %v2792_v27 = vunpack.i.l.bf16 %v2791_v6 }
 0x5b2   : > { %v1678_v19 = vsel %vm1677_vm3, %v1673_v62, %v2792_v27  ;;  %v1679_v29 = vsel %vm1677_vm3, %v1674_v35, %v2793_v46  ;;  %v2632_v27 = vld [vmem:[%s3481_s23 + $0x8] sm:$0xff] }
 0x5b3   : > { %v1682_v34 = vpack.c.bf16 %v1679_v29, %v1678_v19  ;;  %1866 = vmatpush.bf16.msra.mxu3 %v2632_v27  ;;  %v2631_v29 = vld [vmem:[%s3481_s23] sm:$0xff] }
 0x5b5   : > { %2581 = vmatmul.msk.bf16.vlgmr.msra.gmra.mxu2 %vm783_vm1, %v1682_v34 }
 0x5b7   : > { %1867 = vmatpush.bf16.msra.mxu3 %v2631_v29 }
 0x5e6   : > { %v2806_v37 = vpop.permute.xlu1 %2805 }
 0x5e7   : > { %v2808_v56 = vunpack.i.h.bf16 %v2806_v37  ;;  %v2807_v28 = vunpack.i.l.bf16 %v2806_v37 }
 0x5e9   : > { %v1680_v12 = vsel %vm1677_vm3, %v1675_v43, %v2807_v28  ;;  %v1681_v38 = vsel %vm1677_vm3, %v1676_v20, %v2808_v56  ;;  %v1733_v43 = vld [vmem:[%s3465_s25] sm:$0x3] }
 0x5ea   : > { %v1683_v40 = vpack.c.bf16 %v1681_v38, %v1680_v12 }
 0x5ec   : > { %2582 = vmatmul.msk.bf16.gmra.mxu2 %vm783_vm1, %v1683_v40  ;;  %v1822_v40 = vperm.slane %v1733_v43, 0 }
 0x638   : > { %v1719_v48 = vpop.f32.mrf.mxu2 }
 0x639   : > { %v1720_v50 = vadd.f32 %v2810_v49, %v1719_v48 }
 0x63b   : > { %v3820_v47 = vadd.f32 %v2903_v13, %v1720_v50  ;;  %v1827_v13 = vperm.slane %v1733_v43, 1 }
 0x63d   : > { %v1734_v54 = vsel %vm783_vm1, %v3820_v47, 0.0 }
 0x63e   : > { %1735 = vadd.xlane.f32.xlu2 %v1734_v54 }
 0x640   : > { %v1721_v55 = vpop.f32.mrf.mxu2 }
 0x641   : > { %v1722_v53 = vadd.f32 %v2810_v49, %v1721_v55 }
 0x643   : > { %v3824_v57 = vadd.f32 %v2904_v45, %v1722_v53 }
 0x645   : > { %v1737_v58 = vsel %vm783_vm1, %v3824_v57, 0.0 }
 0x646   : > { %1738 = vadd.xlane.f32.xlu0 %v1737_v58 }
 0x66f   : > { %v1724_v51 = vpop.f32.mrf.mxu2 }
 0x670   : > { %v1725_v59 = vadd.f32 %v2810_v49, %v1724_v51 }
 0x672   : > { %v3828_v60 = vadd.f32 %v2905_v42, %v1725_v59 }
 0x674   : > { %v1740_v0 = vsel %vm783_vm1, %v3828_v60, 0.0 }
 0x675   : > { %1741 = vadd.xlane.f32.xlu1 %v1740_v0 }
 0x677   : > { %v1726_v1 = vpop.f32.mrf.mxu2 }
 0x678   : > { %v1727_v44 = vadd.f32 %v2810_v49, %v1726_v1 }
 0x67a   : > { %v3832_v32 = vadd.f32 %v2906_v2, %v1727_v44 }
 0x67c   : > { %v1743_v3 = vsel %vm783_vm1, %v3832_v32, 0.0 }
 0x67d   : > { %1744 = vadd.xlane.f32.xlu2 %v1743_v3 }
 0x6b1   : > { %v1736_v7 = vpop.xlane.xlu2 %1735 }
 0x6b2   : > { %v1746_v30 = vmul.f32 %v1736_v7, %v3502_v24 }
 0x6b4   : > { %v1750_v9 = vsub.f32 %v3820_v47, %v1746_v30 }
 0x6b6   : > { %v1754_v10 = vmul.f32 %v1750_v9, %v1750_v9 }
 0x6b8   : > { %v1758_v14 = vsel %vm783_vm1, %v1754_v10, 0.0 }
 0x6b9   : > { %v1739_v61 = vpop.xlane.xlu0 %1738  ;;  %1759 = vadd.xlane.f32.xlu0 %v1758_v14 }
 0x6ba   : > { %v1747_v15 = vmul.f32 %v1739_v61, %v3502_v24 }
 0x6bc   : > { %v1751_v16 = vsub.f32 %v3824_v57, %v1747_v15 }
 0x6be   : > { %v1755_v52 = vmul.f32 %v1751_v16, %v1751_v16 }
 0x6c0   : > { %v1761_v17 = vsel %vm783_vm1, %v1755_v52, 0.0 }
 0x6c1   : > { %1762 = vadd.xlane.f32.xlu1 %v1761_v17 }
 0x6e8   : > { %v1742_v39 = vpop.xlane.xlu1 %1741 }
 0x6e9   : > { %v1748_v18 = vmul.f32 %v1742_v39, %v3502_v24 }
 0x6eb   : > { %v3844_v4 = vsub.f32 %v3828_v60, %v1748_v18 }
 0x6ed   : > { %v1756_v8 = vmul.f32 %v3844_v4, %v3844_v4 }
 0x6ef   : > { %v1764_v21 = vsel %vm783_vm1, %v1756_v8, 0.0 }
 0x6f0   : > { %1765 = vadd.xlane.f32.xlu2 %v1764_v21  ;;  %v1745_v23 = vpop.xlane.xlu2 %1744 }
 0x6f1   : > { %v1749_v25 = vmul.f32 %v1745_v23, %v3502_v24 }
 0x6f3   : > { %v3851_v63 = vsub.f32 %v3832_v32, %v1749_v25 }
 0x6f5   : > { %v1757_v6 = vmul.f32 %v3851_v63, %v3851_v63 }
 0x6f7   : > { %v1767_v46 = vsel %vm783_vm1, %v1757_v6, 0.0 }
 0x6f8   : > { %1768 = vadd.xlane.f32.xlu0 %v1767_v46 }
 0x72c   : > { %v1760_v62 = vpop.xlane.xlu0 %1759 }
 0x72d   : > { %v1770_v35 = vmul.f32 %v1760_v62, %v3502_v24 }
 0x72f   : > { %v1774_v19 = vadd.f32 1e-05, %v1770_v35  ;;  %v3872_v35 = vld [vmem:[%s747_s15] ss:$0 sm:$0xff] }
 0x731   : > { %2887 = vrsqrt.f32 %v1774_v19  ;;  %vm1784_vm5 = vweird.f32 %v1774_v19 }
 0x734   : > { %v1763_v34 = vpop.xlane.xlu1 %1762 }
 0x735   : > { %v1771_v5 = vmul.f32 %v1763_v34, %v3502_v24 }
 0x737   : > { %v2888_v36 = vpop.eup %2887  ;;  %v1775_v11 = vadd.f32 1e-05, %v1771_v5 }
 0x738   : > { %v1779_v31 = vmul.f32 %v2888_v36, %v1774_v19  ;;  %vm1785_vm4 = vweird.f32 %v2888_v36 }
 0x739   : > { %2889 = vrsqrt.f32 %v1775_v11  ;;  %vm1786_vm6 = vmor %vm1784_vm5, %vm1785_vm4  ;;  %vm1794_vm8 = vweird.f32 %v1775_v11 }
 0x73a   : > { %v1780_v33 = vmul.f32 %v2888_v36, %v1779_v31 }
 0x73c   : > { %v1781_v22 = vmul.f32 0.5, %v1780_v33 }
 0x73e   : > { %v1782_v37 = vsub.f32 1.5, %v1781_v22 }
 0x73f   : > { %v2890_v41 = vpop.eup %2889 }
 0x740   : > { %v1783_v26 = vmul.f32 %v2888_v36, %v1782_v37  ;;  %v1789_v56 = vmul.f32 %v2890_v41, %v1775_v11  ;;  %vm1795_vm7 = vweird.f32 %v2890_v41 }
 0x741   : > { %vm1796_vm9 = vmor %vm1794_vm8, %vm1795_vm7 }
 0x742   : > { %v1790_v28 = vmul.f32 %v2890_v41, %v1789_v56  ;;  %v1787_v20 = vsel %vm1786_vm6, %v2888_v36, %v1783_v26 }
 0x743   : > { %v1818_v49 = vmul.f32 %v1787_v20, %v1750_v9 }
 0x744   : > { %v1791_v12 = vmul.f32 0.5, %v1790_v28 }
 0x745   : > { %v1823_v54 = vmul.f32 %v1822_v40, %v1818_v49 }
 0x746   : > { %v1792_v38 = vsub.f32 1.5, %v1791_v12  ;;  %v2636_v12 = vld [vmem:[%s3479_s0 + $0x18] sm:$0xff] }
 0x747   : > { %v1828_v45 = vadd.f32 %v1827_v13, %v1823_v54  ;;  %2104 = vmatpush.bf16.msra.mxu0 %v2636_v12 }
 0x748   : > { %v1793_v48 = vmul.f32 %v2890_v41, %v1792_v38 }
 0x74a   : > { %v1797_v50 = vsel %vm1796_vm9, %v2890_v41, %v1793_v48  ;;  %vm2093_vm9 = vcmask 523264  }
 0x74b   : > { %v1819_v55 = vmul.f32 %v1797_v50, %v1751_v16 }
 0x74d   : > { %v1824_v53 = vmul.f32 %v1822_v40, %v1819_v55  ;;  %v2635_v55 = vld [vmem:[%s3479_s0 + $0x10] sm:$0xff] }
 0x74e   : > { %2105 = vmatpush.bf16.msra.mxu0 %v2635_v55 }
 0x74f   : > { %v1829_v58 = vadd.f32 %v1827_v13, %v1824_v53 }
 0x751   : > { %v1832_v51 = vpack.c.bf16 %v1829_v58, %v1828_v45 }
 0x753   : > { %2591 = vmatmul.msk.bf16.vlgmr.msra.gmra.mxu3 %vm783_vm1, %v1832_v51 }
 0x763   : > { %v1766_v59 = vpop.xlane.xlu2 %1765 }
 0x764   : > { %v1772_v42 = vmul.f32 %v1766_v59, %v3502_v24 }
 0x766   : > { %v1776_v0 = vadd.f32 1e-05, %v1772_v42 }
 0x768   : > { %2891 = vrsqrt.f32 %v1776_v0  ;;  %vm1804_vm11 = vweird.f32 %v1776_v0 }
 0x76b   : > { %v1769_v1 = vpop.xlane.xlu0 %1768 }
 0x76c   : > { %v1773_v44 = vmul.f32 %v1769_v1, %v3502_v24  ;;  %v2634_v1 = vld [vmem:[%s3479_s0 + $0x8] sm:$0xff] }
 0x76d   : > { %2106 = vmatpush.bf16.msra.mxu0 %v2634_v1 }
 0x76e   : > { %v2892_v2 = vpop.eup %2891  ;;  %v1777_v3 = vadd.f32 1e-05, %v1773_v44 }
 0x76f   : > { %v1799_v7 = vmul.f32 %v2892_v2, %v1776_v0  ;;  %vm1805_vm10 = vweird.f32 %v2892_v2 }
 0x770   : > { %2893 = vrsqrt.f32 %v1777_v3  ;;  %vm1806_vm12 = vmor %vm1804_vm11, %vm1805_vm10  ;;  %vm1814_vm14 = vweird.f32 %v1777_v3 }
 0x771   : > { %v1800_v30 = vmul.f32 %v2892_v2, %v1799_v7 }
 0x773   : > { %v1801_v9 = vmul.f32 0.5, %v1800_v30 }
 0x775   : > { %v1802_v10 = vsub.f32 1.5, %v1801_v9  ;;  %v2633_v9 = vld [vmem:[%s3479_s0] sm:$0xff] }
 0x776   : > { %v2894_v14 = vpop.eup %2893  ;;  %2107 = vmatpush.bf16.msra.mxu0 %v2633_v9 }
 0x777   : > { %v1803_v61 = vmul.f32 %v2892_v2, %v1802_v10  ;;  %v1809_v15 = vmul.f32 %v2894_v14, %v1777_v3  ;;  %vm1815_vm13 = vweird.f32 %v2894_v14 }
 0x778   : > { %vm1816_vm15 = vmor %vm1814_vm14, %vm1815_vm13 }
 0x779   : > { %v1810_v16 = vmul.f32 %v2894_v14, %v1809_v15  ;;  %v1807_v52 = vsel %vm1806_vm12, %v2892_v2, %v1803_v61 }
 0x77a   : > { %v1820_v18 = vmul.f32 %v1807_v52, %v3844_v4 }
 0x77b   : > { %v1811_v17 = vmul.f32 0.5, %v1810_v16 }
 0x77c   : > { %v1825_v25 = vmul.f32 %v1822_v40, %v1820_v18 }
 0x77d   : > { %v1812_v39 = vsub.f32 1.5, %v1811_v17 }
 0x77e   : > { %v1830_v46 = vadd.f32 %v1827_v13, %v1825_v25 }
 0x77f   : > { %v1813_v8 = vmul.f32 %v2894_v14, %v1812_v39 }
 0x781   : > { %v1817_v21 = vsel %vm1816_vm15, %v2894_v14, %v1813_v8 }
 0x782   : > { %v1821_v23 = vmul.f32 %v1817_v21, %v3851_v63 }
 0x784   : > { %v1826_v6 = vmul.f32 %v1822_v40, %v1821_v23 }
 0x786   : > { %v1831_v27 = vadd.f32 %v1827_v13, %v1826_v6 }
 0x788   : > { %v1833_v62 = vpack.c.bf16 %v1831_v27, %v1830_v46 }
 0x78a   : > { %2592 = vmatmul.msk.bf16.gmra.mxu3 %vm783_vm1, %v1833_v62 }
 0x7d6   : > { %v1869_v4 = vpop.f32.mrf.mxu3 }
 0x7d7   : > { %v3875_v19 = vadd.f32 %v3872_v35, %v1869_v4 }
 0x7d9   : > { %v3878_v29 = vmul.f32 0.70710677, %v3875_v19 }
 0x7db   : > { %v1887_v63 = vmul.f32 %v3878_v29, %v3878_v29 }
 0x7dd   : > { %v1888_v34 = vmin.f32 %v1887_v63, 16.0 }
 0x7de   : > { %v1871_v5 = vpop.f32.mrf.mxu3 }
 0x7df   : > { %v1889_v36 = vmul.f32 2.1237322e-06, %v1888_v34  ;;  %v1900_v11 = vmul.f32 3.8918573e-05, %v1888_v34  ;;  %v3883_v31 = vadd.f32 %v3872_v35, %v1871_v5 }
 0x7e1   : > { %v1890_v33 = vadd.f32 0.00028619796, %v1889_v36  ;;  %v1901_v22 = vadd.f32 0.001143296, %v1900_v11  ;;  %v3886_v37 = vmul.f32 0.70710677, %v3883_v31 }
 0x7e3   : > { %v1902_v41 = vmul.f32 %v1901_v22, %v1888_v34  ;;  %v1927_v26 = vmul.f32 %v3886_v37, %v3886_v37  ;;  %v1891_v56 = vmul.f32 %v1890_v33, %v1888_v34 }
 0x7e5   : > { %v1903_v28 = vadd.f32 0.014752088, %v1902_v41  ;;  %v1928_v43 = vmin.f32 %v1927_v26, 16.0  ;;  %v1892_v49 = vadd.f32 0.0036580483, %v1891_v56 }
 0x7e7   : > { %v1904_v20 = vmul.f32 %v1903_v28, %v1888_v34  ;;  %v1929_v38 = vmul.f32 2.1237322e-06, %v1928_v43  ;;  %v1940_v40 = vmul.f32 3.8918573e-05, %v1928_v43  ;;  %v1893_v58 = vmul.f32 %v1892_v49, %v1888_v34 }
 0x7e9   : > { %v1905_v48 = vadd.f32 0.112945676, %v1904_v20  ;;  %v1930_v50 = vadd.f32 0.00028619796, %v1929_v38  ;;  %v1941_v13 = vadd.f32 0.001143296, %v1940_v40 }
 0x7ea   : > { %v1894_v2 = vadd.f32 0.05243302, %v1893_v58  ;;  %v1879_v58 = vmul.f32 0.5, %v3875_v19 }
 0x7eb   : > { %v1906_v54 = vmul.f32 %v1905_v48, %v1888_v34  ;;  %v1931_v53 = vmul.f32 %v1930_v50, %v1928_v43  ;;  %v1942_v45 = vmul.f32 %v1941_v13, %v1928_v43 }
 0x7ec   : > { %v1895_v14 = vmul.f32 %v1894_v2, %v1888_v34 }
 0x7ed   : > { %v1907_v51 = vadd.f32 0.4994258, %v1906_v54  ;;  %v1932_v59 = vadd.f32 0.0036580483, %v1931_v53  ;;  %v1943_v42 = vadd.f32 0.014752088, %v1942_v45 }
 0x7ee   : > { %v1896_v17 = vadd.f32 0.18741608, %v1895_v14 }
 0x7ef   : > { %v1908_v0 = vmul.f32 %v1907_v51, %v1888_v34  ;;  %v1944_v44 = vmul.f32 %v1943_v42, %v1928_v43  ;;  %v1933_v7 = vmul.f32 %v1932_v59, %v1928_v43  ;;  %v1880_v51 = vmul.f32 0.5, %v3883_v31 }
 0x7f0   : > { %v1897_v23 = vmul.f32 %v1896_v17, %v1888_v34 }
 0x7f1   : > { %v1909_v3 = vadd.f32 1.0, %v1908_v0  ;;  %v1945_v30 = vadd.f32 0.112945676, %v1944_v44  ;;  %v1934_v61 = vadd.f32 0.05243302, %v1933_v7 }
 0x7f2   : > { %v1898_v4 = vadd.f32 1.1283791, %v1897_v23 }
 0x7f3   : > { %2895 = vrcp.f32 %v1909_v3  ;;  %v1946_v10 = vmul.f32 %v1945_v30, %v1928_v43  ;;  %v1935_v18 = vmul.f32 %v1934_v61, %v1928_v43  ;;  %v1921_v6 = vand.u32 2147483648, %v1909_v3 }
 0x7f4   : > { %v1919_v27 = vand.u32 2147483647, %v1909_v3  ;;  %vm1915_vm2 = vweird.f32 %v1909_v3  ;;  %v1899_v41 = vmul.f32 %v1898_v4, %v3878_v29 }
 0x7f5   : > { %v1947_v15 = vadd.f32 0.4994258, %v1946_v10  ;;  %v1936_v46 = vadd.f32 0.18741608, %v1935_v18  ;;  %v1922_v36 = vor.u32 1.1754944e-38, %v1921_v6 }
 0x7f6   : > { %vm1920_vm4 = vcmp.eq.f32.partialorder %v1919_v27, 8.507059e+37 }
 0x7f7   : > { %v1948_v16 = vmul.f32 %v1947_v15, %v1928_v43  ;;  %v1937_v11 = vmul.f32 %v1936_v46, %v1928_v43 }
 0x7f9   : > { %v2896_v52 = vpop.eup %2895  ;;  %v1949_v8 = vadd.f32 1.0, %v1948_v16  ;;  %v1938_v34 = vadd.f32 1.1283791, %v1937_v11 }
 0x7fa   : > { %v1911_v39 = vmul.f32 %v2896_v52, %v1909_v3  ;;  %vm1916_vm0 = vweird.f32 %v2896_v52 }
 0x7fb   : > { %2897 = vrcp.f32 %v1949_v8  ;;  %vm1917_vm3 = vmor %vm1915_vm2, %vm1916_vm0  ;;  %v1961_v56 = vand.u32 2147483648, %v1949_v8  ;;  %v1959_v12 = vand.u32 2147483647, %v1949_v8  ;;  %vm1955_vm6 = vweird.f32 %v1949_v8 }
 0x7fc   : > { %v1912_v21 = vsub.f32 1.0, %v1911_v39  ;;  %v1939_v48 = vmul.f32 %v1938_v34, %v3886_v37 }
 0x7fd   : > { %v1962_v40 = vor.u32 1.1754944e-38, %v1961_v56  ;;  %vm1960_vm8 = vcmp.eq.f32.partialorder %v1959_v12, 8.507059e+37 }
 0x7fe   : > { %v1913_v25 = vmul.f32 %v2896_v52, %v1912_v21 }
 0x800   : > { %v1914_v62 = vadd.f32 %v2896_v52, %v1913_v25 }
 0x801   : > { %v2898_v63 = vpop.eup %2897 }
 0x802   : > { %v1918_v5 = vsel %vm1917_vm3, %v2896_v52, %v1914_v62  ;;  %v1951_v33 = vmul.f32 %v2898_v63, %v1949_v8  ;;  %vm1956_vm5 = vweird.f32 %v2898_v63 }
 0x803   : > { %v1923_v22 = vsel %vm1920_vm4, %v1922_v36, %v1918_v5  ;;  %vm1957_vm7 = vmor %vm1955_vm6, %vm1956_vm5 }
 0x804   : > { %v1952_v26 = vsub.f32 1.0, %v1951_v33  ;;  %v1924_v28 = vmul.f32 %v1923_v22, %v1899_v41 }
 0x806   : > { %v1953_v20 = vmul.f32 %v2898_v63, %v1952_v26  ;;  %v2593_v49 = vclamps-f32 %v1924_v28, 1.0 }
 0x808   : > { %v1954_v38 = vadd.f32 %v2898_v63, %v1953_v20  ;;  %v2047_v55 = vadd.f32 1.0, %v2593_v49 }
 0x80a   : > { %v1958_v43 = vsel %vm1957_vm7, %v2898_v63, %v1954_v38  ;;  %v2051_v42 = vmul.f32 %v2047_v55, %v1879_v58 }
 0x80b   : > { %v1963_v50 = vsel %vm1960_vm8, %v1962_v40, %v1958_v43 }
 0x80c   : > { %v1964_v13 = vmul.f32 %v1963_v50, %v1939_v48 }
 0x80d   : > { %v1874_v54 = vpop.f32.mrf.mxu3 }
 0x80e   : > { %v3897_v29 = vadd.f32 %v3872_v35, %v1874_v54  ;;  %v2594_v53 = vclamps-f32 %v1964_v13, 1.0 }
 0x810   : > { %v3900_v45 = vmul.f32 0.70710677, %v3897_v29  ;;  %v2048_v59 = vadd.f32 1.0, %v2594_v53 }
 0x812   : > { %v1967_v37 = vmul.f32 %v3900_v45, %v3900_v45  ;;  %v2052_v0 = vmul.f32 %v2048_v59, %v1880_v51 }
 0x814   : > { %v1968_v1 = vmin.f32 %v1967_v37, 16.0  ;;  %v2055_v44 = vpack.c.bf16 %v2052_v0, %v2051_v42 }
 0x815   : > { %v1876_v2 = vpop.f32.mrf.mxu3 }
 0x816   : > { %v1969_v3 = vmul.f32 2.1237322e-06, %v1968_v1  ;;  %v1980_v7 = vmul.f32 3.8918573e-05, %v1968_v1  ;;  %v3907_v30 = vadd.f32 %v3872_v35, %v1876_v2  ;;  %2613 = vmatmul.msk.bf16.vlgmr.msra.gmra.mxu0 %vm2093_vm9, %v2055_v44 }
 0x818   : > { %v1970_v19 = vadd.f32 0.00028619796, %v1969_v3  ;;  %v1981_v9 = vadd.f32 0.001143296, %v1980_v7  ;;  %v3911_v31 = vmul.f32 0.70710677, %v3907_v30 }
 0x81a   : > { %v1982_v10 = vmul.f32 %v1981_v9, %v1968_v1  ;;  %v2007_v14 = vmul.f32 %v3911_v31, %v3911_v31  ;;  %v1971_v61 = vmul.f32 %v1970_v19, %v1968_v1 }
 0x81c   : > { %v1983_v15 = vadd.f32 0.014752088, %v1982_v10  ;;  %v2008_v16 = vmin.f32 %v2007_v14, 16.0  ;;  %v1972_v18 = vadd.f32 0.0036580483, %v1971_v61 }
 0x81e   : > { %v1984_v52 = vmul.f32 %v1983_v15, %v1968_v1  ;;  %v2009_v17 = vmul.f32 2.1237322e-06, %v2008_v16  ;;  %v2020_v39 = vmul.f32 3.8918573e-05, %v2008_v16  ;;  %v1973_v46 = vmul.f32 %v1972_v18, %v1968_v1 }
 0x820   : > { %v1985_v35 = vadd.f32 0.112945676, %v1984_v52  ;;  %v2010_v8 = vadd.f32 0.00028619796, %v2009_v17  ;;  %v2021_v21 = vadd.f32 0.001143296, %v2020_v39 }
 0x821   : > { %v1974_v36 = vadd.f32 0.05243302, %v1973_v46 }
 0x822   : > { %v1986_v23 = vmul.f32 %v1985_v35, %v1968_v1  ;;  %v2011_v25 = vmul.f32 %v2010_v8, %v2008_v16  ;;  %v2022_v6 = vmul.f32 %v2021_v21, %v2008_v16  ;;  %v1881_v35 = vmul.f32 0.5, %v3897_v29 }
 0x823   : > { %v1975_v26 = vmul.f32 %v1974_v36, %v1968_v1  ;;  %v1882_v8 = vmul.f32 0.5, %v3907_v30 }
 0x824   : > { %v1987_v27 = vadd.f32 0.4994258, %v1986_v23  ;;  %v2012_v62 = vadd.f32 0.0036580483, %v2011_v25  ;;  %v2023_v4 = vadd.f32 0.014752088, %v2022_v6 }
 0x825   : > { %v1976_v12 = vadd.f32 0.18741608, %v1975_v26 }
 0x826   : > { %v1988_v63 = vmul.f32 %v1987_v27, %v1968_v1  ;;  %v2024_v5 = vmul.f32 %v2023_v4, %v2008_v16  ;;  %v2013_v33 = vmul.f32 %v2012_v62, %v2008_v16 }
 0x827   : > { %v1977_v43 = vmul.f32 %v1976_v12, %v1968_v1 }
 0x828   : > { %v1989_v11 = vadd.f32 1.0, %v1988_v63  ;;  %v2025_v22 = vadd.f32 0.112945676, %v2024_v5  ;;  %v2014_v34 = vadd.f32 0.05243302, %v2013_v33 }
 0x829   : > { %v1978_v58 = vadd.f32 1.1283791, %v1977_v43 }
 0x82a   : > { %2899 = vrcp.f32 %v1989_v11  ;;  %v2026_v41 = vmul.f32 %v2025_v22, %v2008_v16  ;;  %v2015_v40 = vmul.f32 %v2014_v34, %v2008_v16  ;;  %v2001_v13 = vand.u32 2147483648, %v1989_v11 }
 0x82b   : > { %v1999_v55 = vand.u32 2147483647, %v1989_v11  ;;  %vm1995_vm11 = vweird.f32 %v1989_v11  ;;  %v1979_v2 = vmul.f32 %v1978_v58, %v3900_v45 }
 0x82c   : > { %v2027_v56 = vadd.f32 0.4994258, %v2026_v41  ;;  %v2016_v54 = vadd.f32 0.18741608, %v2015_v40  ;;  %v2002_v37 = vor.u32 1.1754944e-38, %v2001_v13 }
 0x82d   : > { %vm2000_vm13 = vcmp.eq.f32.partialorder %v1999_v55, 8.507059e+37 }
 0x82e   : > { %v2028_v28 = vmul.f32 %v2027_v56, %v2008_v16  ;;  %v2017_v42 = vmul.f32 %v2016_v54, %v2008_v16 }
 0x830   : > { %v2900_v20 = vpop.eup %2899  ;;  %v2029_v49 = vadd.f32 1.0, %v2028_v28  ;;  %v2018_v1 = vadd.f32 1.1283791, %v2017_v42 }
 0x831   : > { %v1991_v38 = vmul.f32 %v2900_v20, %v1989_v11  ;;  %vm1996_vm10 = vweird.f32 %v2900_v20 }
 0x832   : > { %2901 = vrcp.f32 %v2029_v49  ;;  %vm1997_vm12 = vmor %vm1995_vm11, %vm1996_vm10  ;;  %v2041_v7 = vand.u32 2147483648, %v2029_v49  ;;  %v2039_v10 = vand.u32 2147483647, %v2029_v49  ;;  %vm2035_vm15 = vweird.f32 %v2029_v49 }
 0x833   : > { %v1992_v48 = vsub.f32 1.0, %v1991_v38  ;;  %v2019_v16 = vmul.f32 %v2018_v1, %v3911_v31  ;;  %v2812_v31 = vld [vmem:[%s755_s27] ss:$0 sm:$0xff] }
 0x834   : > { %v2042_v61 = vor.u32 1.1754944e-38, %v2041_v7  ;;  %vm2040_vm2 = vcmp.eq.f32.partialorder %v2039_v10, 8.507059e+37 }
 0x835   : > { %v1993_v50 = vmul.f32 %v2900_v20, %v1992_v48 }
 0x837   : > { %v1994_v53 = vadd.f32 %v2900_v20, %v1993_v50 }
 0x838   : > { %v2902_v51 = vpop.eup %2901 }
 0x839   : > { %v1998_v59 = vsel %vm1997_vm12, %v2900_v20, %v1994_v53  ;;  %v2031_v0 = vmul.f32 %v2902_v51, %v2029_v49  ;;  %vm2036_vm14 = vweird.f32 %v2902_v51 }
 0x83a   : > { %v2003_v44 = vsel %vm2000_vm13, %v2002_v37, %v1998_v59  ;;  %vm2037_vm0 = vmor %vm2035_vm15, %vm2036_vm14 }
 0x83b   : > { %v2032_v3 = vsub.f32 1.0, %v2031_v0  ;;  %v2004_v19 = vmul.f32 %v2003_v44, %v1979_v2 }
 0x83d   : > { %v2033_v9 = vmul.f32 %v2902_v51, %v2032_v3  ;;  %v2595_v15 = vclamps-f32 %v2004_v19, 1.0 }
 0x83f   : > { %v2034_v14 = vadd.f32 %v2902_v51, %v2033_v9  ;;  %v2049_v39 = vadd.f32 1.0, %v2595_v15 }
 0x841   : > { %v2038_v52 = vsel %vm2037_vm0, %v2902_v51, %v2034_v14  ;;  %v2053_v23 = vmul.f32 %v2049_v39, %v1881_v35 }
 0x842   : > { %v2043_v17 = vsel %vm2040_vm2, %v2042_v61, %v2038_v52 }
 0x843   : > { %v2044_v45 = vmul.f32 %v2043_v17, %v2019_v16 }
 0x845   : > { %v2596_v18 = vclamps-f32 %v2044_v45, 1.0 }
 0x847   : > { %v2050_v21 = vadd.f32 1.0, %v2596_v18 }
 0x849   : > { %v2054_v25 = vmul.f32 %v2050_v21, %v1882_v8 }
 0x84b   : > { %v2056_v6 = vpack.c.bf16 %v2054_v25, %v2053_v23 }
 0x84d   : > { %2614 = vmatmul.msk.bf16.gmra.mxu0 %vm2093_vm9, %v2056_v6 }
 0x893   : > { %v2109_v46 = vpop.f32.mrf.mxu0 }
 0x894   : > { %v2110_v27 = vadd.f32 %v2812_v31, %v2109_v46 }
 0x896   : > { %v2119_v62 = vadd.f32 %v2110_v27, %v3820_v47 }
 0x898   : > { %2123 = vst.msk [vmem:[#allocation2] sm:$0xff] %vm783_vm1, %v2119_v62 }
 0x899   : > { %2127 = vst.msk [vmem:[%s3483_s28] sm:$0xff] %vm783_vm1, %v2119_v62 }
 0x89b   : > { %v2111_v29 = vpop.f32.mrf.mxu0 }
 0x89c   : > { %v2112_v30 = vadd.f32 %v2812_v31, %v2111_v29 }
 0x89e   : > { %v2120_v4 = vadd.f32 %v2112_v30, %v3824_v57 }
 0x8a0   : > { %2124 = vst.msk [vmem:[#allocation2 + $0x8] sm:$0xff] %vm783_vm1, %v2120_v4 }
 0x8a1   : > { %2128 = vst.msk [vmem:[%s3483_s28 + $0x8] sm:$0xff] %vm783_vm1, %v2120_v4 }
 0x8ca   : > { %v2114_v63 = vpop.f32.mrf.mxu0 }
 0x8cb   : > { %v2115_v5 = vadd.f32 %v2812_v31, %v2114_v63 }
 0x8cd   : > { %v2121_v36 = vadd.f32 %v2115_v5, %v3828_v60 }
 0x8cf   : > { %2125 = vst.msk [vmem:[#allocation2 + $0x10] sm:$0xff] %vm783_vm1, %v2121_v36 }
 0x8d0   : > { %2129 = vst.msk [vmem:[%s3483_s28 + $0x10] sm:$0xff] %vm783_vm1, %v2121_v36 }
 0x8d2   : > { %v2116_v47 = vpop.f32.mrf.mxu0 }
 0x8d3   : > { %v2117_v11 = vadd.f32 %v2812_v31, %v2116_v47 }
 0x8d4   : > { %2134 = sbr.rel (%p2615_p9) target bundleno = 2543 (0x9ef), region = 100 }
 0x8d5   : > { %v2122_v33 = vadd.f32 %v2117_v11, %v3832_v32 }
 0x8d7   : > { %2126 = vst.msk [vmem:[#allocation2 + $0x18] sm:$0xff] %vm783_vm1, %v2122_v33 }
 0x8d8   : > { %2130 = vst.msk [vmem:[%s3483_s28 + $0x18] sm:$0xff] %vm783_vm1, %v2122_v33 }
 0x8d9   : > { %v2142_v57 = vsel %vm783_vm1, %v2121_v36, 0.0  ;;  %v2136_v22 = vsel %vm783_vm1, %v2119_v62, 0.0  ;;  %v2145_v60 = vsel %vm783_vm1, %v2122_v33, 0.0  ;;  %v2139_v41 = vsel %vm783_vm1, %v2120_v4, 0.0  ;;  %v2135_v35 = vld [vmem:[%s4095_s24] sm:$0x3] }
 0x8da   : > { %2143 = vadd.xlane.f32.xlu1 %v2142_v57  ;;  %2137 = vadd.xlane.f32.xlu0 %v2136_v22  ;;  %v2224_v31 = vperm.slane %v2135_v35, 0 }
 0x8e2   : > { %2146 = vadd.xlane.f32.xlu1 %v2145_v60  ;;  %2140 = vadd.xlane.f32.xlu0 %v2139_v41 }
 0x94d   : > { %v2144_v32 = vpop.xlane.xlu1 %2143  ;;  %v2138_v26 = vpop.xlane.xlu0 %2137 }
 0x94e   : > { %v2150_v34 = vmul.f32 %v2144_v32, %v3502_v24  ;;  %v2148_v56 = vmul.f32 %v2138_v26, %v3502_v24 }
 0x950   : > { %v3948_v28 = vsub.f32 %v2121_v36, %v2150_v34  ;;  %v2152_v20 = vsub.f32 %v2119_v62, %v2148_v56 }
 0x952   : > { %v2158_v12 = vmul.f32 %v3948_v28, %v3948_v28  ;;  %v2156_v38 = vmul.f32 %v2152_v20, %v2152_v20 }
 0x954   : > { %v2166_v40 = vsel %vm783_vm1, %v2158_v12, 0.0  ;;  %v2160_v49 = vsel %vm783_vm1, %v2156_v38, 0.0 }
 0x955   : > { %v2147_v48 = vpop.xlane.xlu1 %2146  ;;  %2167 = vadd.xlane.f32.xlu0 %v2166_v40  ;;  %2161 = vadd.xlane.f32.xlu2 %v2160_v49  ;;  %v2141_v43 = vpop.xlane.xlu0 %2140 }
 0x956   : > { %v2151_v50 = vmul.f32 %v2147_v48, %v3502_v24  ;;  %v2149_v13 = vmul.f32 %v2141_v43, %v3502_v24 }
 0x958   : > { %v3956_v54 = vsub.f32 %v2122_v33, %v2151_v50  ;;  %v3958_v55 = vsub.f32 %v2120_v4, %v2149_v13  ;;  %v2229_v4 = vperm.slane %v2135_v35, 1 }
 0x95a   : > { %v2159_v53 = vmul.f32 %v3956_v54, %v3956_v54  ;;  %v2157_v58 = vmul.f32 %v3958_v55, %v3958_v55 }
 0x95c   : > { %v2169_v51 = vsel %vm783_vm1, %v2159_v53, 0.0  ;;  %v2163_v59 = vsel %vm783_vm1, %v2157_v58, 0.0 }
 0x95d   : > { %2170 = vadd.xlane.f32.xlu1 %v2169_v51  ;;  %2164 = vadd.xlane.f32.xlu2 %v2163_v59 }
 0x9c8   : > { %v2162_v37 = vpop.xlane.xlu2 %2161  ;;  %v2168_v42 = vpop.xlane.xlu0 %2167 }
 0x9c9   : > { %v2172_v0 = vmul.f32 %v2162_v37, %v3502_v24  ;;  %v2174_v44 = vmul.f32 %v2168_v42, %v3502_v24 }
 0x9cb   : > { %v2176_v2 = vadd.f32 1e-05, %v2172_v0  ;;  %v2178_v3 = vadd.f32 1e-05, %v2174_v44 }
 0x9cd   : > { %2907 = vrsqrt.f32 %v2176_v2  ;;  %vm2186_vm5 = vweird.f32 %v2176_v2  ;;  %vm2206_vm7 = vweird.f32 %v2178_v3 }
 0x9ce   : > { %2909 = vrsqrt.f32 %v2178_v3 }
 0x9d0   : > { %v2171_v1 = vpop.xlane.xlu1 %2170  ;;  %v2165_v7 = vpop.xlane.xlu2 %2164 }
 0x9d1   : > { %v2175_v19 = vmul.f32 %v2171_v1, %v3502_v24  ;;  %v2173_v9 = vmul.f32 %v2165_v7, %v3502_v24 }
 0x9d3   : > { %v2908_v10 = vpop.eup %2907  ;;  %v2179_v14 = vadd.f32 1e-05, %v2175_v19  ;;  %v2177_v61 = vadd.f32 1e-05, %v2173_v9 }
 0x9d4   : > { %v2910_v15 = vpop.eup %2909  ;;  %v2181_v16 = vmul.f32 %v2908_v10, %v2176_v2  ;;  %vm2187_vm3 = vweird.f32 %v2908_v10 }
 0x9d5   : > { %v2201_v52 = vmul.f32 %v2910_v15, %v2178_v3  ;;  %2911 = vrsqrt.f32 %v2179_v14  ;;  %vm2207_vm4 = vweird.f32 %v2910_v15  ;;  %vm2188_vm6 = vmor %vm2186_vm5, %vm2187_vm3  ;;  %vm2216_vm11 = vweird.f32 %v2179_v14 }
 0x9d6   : > { %v2182_v17 = vmul.f32 %v2908_v10, %v2181_v16  ;;  %2913 = vrsqrt.f32 %v2177_v61  ;;  %vm2208_vm8 = vmor %vm2206_vm7, %vm2207_vm4  ;;  %vm2196_vm13 = vweird.f32 %v2177_v61 }
 0x9d7   : > { %v2202_v45 = vmul.f32 %v2910_v15, %v2201_v52 }
 0x9d8   : > { %v2183_v39 = vmul.f32 0.5, %v2182_v17 }
 0x9d9   : > { %v2203_v18 = vmul.f32 0.5, %v2202_v45 }
 0x9da   : > { %v2184_v8 = vsub.f32 1.5, %v2183_v39 }
 0x9db   : > { %v2912_v21 = vpop.eup %2911  ;;  %v2204_v24 = vsub.f32 1.5, %v2203_v18 }
 0x9dc   : > { %v2914_v23 = vpop.eup %2913  ;;  %v2185_v25 = vmul.f32 %v2908_v10, %v2184_v8  ;;  %v2211_v6 = vmul.f32 %v2912_v21, %v2179_v14  ;;  %vm2217_vm9 = vweird.f32 %v2912_v21 }
 0x9dd   : > { %v2205_v46 = vmul.f32 %v2910_v15, %v2204_v24  ;;  %v2191_v27 = vmul.f32 %v2914_v23, %v2177_v61  ;;  %vm2197_vm10 = vweird.f32 %v2914_v23  ;;  %vm2218_vm12 = vmor %vm2216_vm11, %vm2217_vm9 }
 0x9de   : > { %v2189_v62 = vsel %vm2188_vm6, %v2908_v10, %v2185_v25  ;;  %v2212_v29 = vmul.f32 %v2912_v21, %v2211_v6  ;;  %vm2198_vm14 = vmor %vm2196_vm13, %vm2197_vm10 }
 0x9df   : > { %v2220_v30 = vmul.f32 %v2189_v62, %v2152_v20  ;;  %v2209_v63 = vsel %vm2208_vm8, %v2910_v15, %v2205_v46  ;;  %v2192_v5 = vmul.f32 %v2914_v23, %v2191_v27 }
 0x9e0   : > { %v2222_v36 = vmul.f32 %v2209_v63, %v3948_v28  ;;  %v2213_v47 = vmul.f32 0.5, %v2212_v29 }
 0x9e1   : > { %v2225_v11 = vmul.f32 %v2224_v31, %v2220_v30  ;;  %v2193_v33 = vmul.f32 0.5, %v2192_v5 }
 0x9e2   : > { %v2227_v57 = vmul.f32 %v2224_v31, %v2222_v36  ;;  %v2214_v22 = vsub.f32 1.5, %v2213_v47 }
 0x9e3   : > { %v2230_v60 = vadd.f32 %v2229_v4, %v2225_v11  ;;  %v2194_v41 = vsub.f32 1.5, %v2193_v33 }
 0x9e4   : > { %v2232_v32 = vadd.f32 %v2229_v4, %v2227_v57  ;;  %v2215_v26 = vmul.f32 %v2912_v21, %v2214_v22 }
 0x9e5   : > { %2234 = vst.msk [vmem:[#allocation12] sm:$0xff] %vm783_vm1, %v2230_v60  ;;  %v2195_v34 = vmul.f32 %v2914_v23, %v2194_v41 }
 0x9e6   : > { %2236 = vst.msk [vmem:[#allocation12 + $0x10] sm:$0xff] %vm783_vm1, %v2232_v32  ;;  %v2219_v56 = vsel %vm2218_vm12, %v2912_v21, %v2215_v26 }
 0x9e7   : > { %v2223_v28 = vmul.f32 %v2219_v56, %v3956_v54  ;;  %v2199_v20 = vsel %vm2198_vm14, %v2914_v23, %v2195_v34 }
 0x9e8   : > { %v2221_v12 = vmul.f32 %v2199_v20, %v3958_v55 }
 0x9e9   : > { %v2228_v38 = vmul.f32 %v2224_v31, %v2223_v28 }
 0x9ea   : > { %v2226_v40 = vmul.f32 %v2224_v31, %v2221_v12 }
 0x9eb   : > { %v2233_v49 = vadd.f32 %v2229_v4, %v2228_v38 }
 0x9ec   : > { %v2231_v48 = vadd.f32 %v2229_v4, %v2226_v40 }
 0x9ed   : > { %2237 = vst.msk [vmem:[#allocation12 + $0x18] sm:$0xff] %vm783_vm1, %v2233_v49 }
 0x9ee   : > { %2235 = vst.msk [vmem:[#allocation12 + $0x8] sm:$0xff] %vm783_vm1, %v2231_v48 }
 0x9ef PF: > { %s3203_s3 = smov [#allocation12]   ;;  %s4096_s18 = sld [smem:[#allocation38_spill]] }
 0x9f0   : > { %s2252_s8 = sshll.u32 %s3203_s3, 4  ;;  %s3204_s11 = smov 128   ;;  %s2253_s8 = int_to_ptr.vmem [resolvable:$true] %s2252_s8 }
 0x9f1   : > { %s2637_s29 = sshll.u32 %s3179_s16, 5  ;;  %s2272_s4 = sshll.u32 %s3483_s28, 4  ;;  %s2273_s4 = int_to_ptr.vmem [resolvable:$true] %s2272_s4 }
 0x9f2   : > { %s4098_s6 = sld [smem:[#allocation39_spill]]  ;;  %s2239_s15 = scalar_lea.sflag [#allocation14], %s3429_s10 }
 0x9f5   : > { %s2254_s22 = sshll.u32 %s4096_s18, 4  ;;  %s2255_s22 = int_to_ptr.hbm [resolvable:$true] %s2254_s22 }
 0x9f6   : > { %2653 = dma.vmem_to_hbm [thread:$0]  (%p422_p10), %s2253_s8, 512, %s2255_s22, [#allocation5], %s3204_s11, %s3204_s11, %s3200_s21  }
 0x9f8   : > { %s2271_s25 = scalar_lea.hbm %s4098_s6, %s2637_s29  ;;  %s3113_s16 = scalar_lea.hbm %s4098_s6, 64 }
 0x9f9   : > { %s2274_s23 = sshll.u32 %s2271_s25, 4  ;;  %s2275_s23 = int_to_ptr.hbm [resolvable:$true] %s2274_s23 }
 0x9fa   : > { %s3107_s0 = sshra.s32 %s2275_s23, 4  ;;  %s3108_s0 = int_to_ptr.hbm [resolvable:$true] %s3107_s0 }
 0x9fb   : > { %s3109_s2 = scalar_lea.hbm %s3108_s0, 32  ;;  %p3114_p4 = scmp.lt.s32.totalorder %s3108_s0, %s4098_s6 }
 0x9fc   : > { %p3110_p11 = scmp.ne.s32.totalorder %s3108_s0, %s3109_s2  ;;  %p3115_p5 = scmp.lt.s32.totalorder %s3113_s16, %s3109_s2 }
 0x9fe   : > { %p3111_p12 = pnand %p3110_p11, %p3384_p0  ;;  %p3116_p1 = por %p3115_p5, %p3114_p4 }
 0xa00   : > { %p3112_p13 = pneg %p3111_p12 }
 0xa02   : > { %p3117_p6 = pnand %p3116_p1, %p3112_p13 }
 0xa04   : > { %3120 = shalt.err (!%p3117_p6)
}
 0xa05   : > { %2654 = dma.vmem_to_hbm [thread:$0]  (%p3384_p0), %s2273_s4, 512, %s2275_s23, %s2239_s15, %s3204_s11, %s3204_s11, %s3200_s21  }
 0xa06   : > { %3158 = dma.done.wait (%p422_p10), [#allocation5], 512  }
 0xa07   : > { %3160 = vsyncadd (%p422_p10), [#allocation5], 4294966784 }
 0xa08 PF: > { %s4099_s10 = sld [smem:[#allocation20_spill]]  ;;  %p2676_p7 = pnand %p2528_p3, %p3388_p2 }
 0xa09   : > { %s4101_s8 = sld [smem:[#allocation23_spill]] }
 0xa0a   : > { %p2677_p8 = pneg %p2676_p7 }
 0xa0e   : > { %s2294_s17 = sand.u32 1, %s4099_s10  }
 0xa0f   : > { %s2295_s26 = scalar_lea.sflag [#allocation14], %s2294_s17 }
 0xa10   : > { %3162 = dma.done.wait (%p2677_p8), %s2295_s26, 512  }
 0xa11   : > { %3164 = vsyncadd (%p2677_p8), %s2295_s26, 4294966784  ;;  %s36_s18 = sadd.s32 1, %s4101_s8   ;;  %s4102_s21 = sld [smem:[#allocation21_spill]] }
 0xa12   : > { %p33_p0 = scmp.ge.s32.totalorder %s36_s18, 4   ;;  %s4103_s15 = sld [smem:[#allocation25_spill]] }
 0xa13   : > { %s4104_s16 = sld [smem:[#allocation22_spill]]  ;;  %s4106_s29 = smov %s3171_s30 }
 0xa14   : > { %s4105_s17 = sld [smem:[#allocation24_spill]]  ;;  %35 = sbr.rel (!%p33_p0) target bundleno = 23 (0x17), region = 196 }
 0xa17   : > { %s4107_s30 = smov %s4102_s21 }
 0xa19   :  { %2301 = vsyncpa [#allocation4], 1 }
 0xa1a   :  { %2303 = vsyncpa [#allocation4 + $0x1], 1 }
 0xa1b   :  { %2304 = vsyncpa [#allocation7], 1 }
 0xa1c   :  { %2306 = vsyncpa [#allocation7 + $0x1], 1 }
 0xa1d   :  { %2307 = vsyncpa [#allocation10], 1 }
 0xa1e   :  { %2309 = vsyncpa [#allocation10 + $0x1], 1 }
 0xa1f   :  { %2310 = vsyncpa [#allocation5], 1 }
 0xa20   :  { %2312 = vsyncpa [#allocation5 + $0x1], 1 }
 0xa21   :  { %2313 = vsyncpa [#allocation14], 1 }
 0xa22   :  { %2315 = vsyncpa [#allocation14 + $0x1], 1 }

</bundles_post_ra>
